<compile_context>
chip_gen: v7x
topology: tpu7x:2x2x1
jax: 0.10.0
libtpu: 0.0.40
codegen_flags: <defaults>
</compile_context>

<pallas_src>
from functools import partial

import jax
import jax.numpy as jnp
from jax.experimental import pallas as pl
from jax.experimental.pallas import tpu as pltpu


def _fused_kernel(tok_ref, tableT_ref, wconv_ref, bconv_ref, w1_ref, b1_ref,
                  w2_ref, b2_ref, out_ref, *, vocab_size, max_len, L_out, filter_size):
    tok = tok_ref[...]                      # (max_len, TB) int32 -- batch in lanes
    tableT = tableT_ref[...]                # (emb, vocab), compute dtype (f32 or bf16)
    cdt = tableT.dtype
    tb = tok.shape[1]

    # ---- Embedding gather fused in-kernel (one-hot matmul against resident table) ----
    rows = []
    for c in range(max_len):                # static unroll, max_len is small
        tok_c = tok[c:c + 1, :]                                              # (1, TB)
        vocab_iota = jax.lax.broadcasted_iota(jnp.int32, (vocab_size, tb), 0)
        onehot_c = (vocab_iota == tok_c).astype(cdt)                         # (vocab, TB)
        rows.append(jnp.dot(tableT, onehot_c, preferred_element_type=cdt))   # (emb, TB)
    xT = jnp.concatenate(rows, axis=0)      # (max_len*emb, TB)

    # ---- Conv1d: every tap & channel fused into ONE MXU matmul (Toeplitz weight) ----
    conv = jnp.dot(wconv_ref[...], xT, preferred_element_type=jnp.float32)
    conv = jnp.maximum(conv + bconv_ref[...], 0.0)          # (filter*L_out, TB), ReLU

    # ---- AdaptiveMaxPool1d(1) after transpose == max over the filter axis ----
    pooled = conv[0:L_out, :]
    for f in range(1, filter_size):
        pooled = jnp.maximum(pooled, conv[f * L_out:(f + 1) * L_out, :])     # (L_out, TB)

    # ---- linear1 + ReLU (dropout2 = identity at inference), then linear2 ----
    h = jnp.dot(w1_ref[...], pooled, preferred_element_type=jnp.float32) + b1_ref[...]
    h = jnp.maximum(h, 0.0)                                                  # (hidden, TB)
    y = jnp.dot(w2_ref[...], h, preferred_element_type=jnp.float32) + b2_ref[...]
    out_ref[...] = y.astype(out_ref.dtype)                                   # (2, TB)


@partial(jax.jit, static_argnames=("compute_dtype", "tile_b"))
def original_model_forward(tokens, params, *, compute_dtype=jnp.float32, tile_b=512):
    emb_table, wconv, bconv, w1, b1, w2, b2 = params
    vocab_size, emb_size = emb_table.shape
    filter_size, max_len, kernel_size = wconv.shape
    L_out = emb_size - kernel_size + 1
    hidden_size = w1.shape[0]
    B = tokens.shape[0]

    # ---- one-time weight folds (pure functions of the parameters) ----
    # Unfold Conv1d into a (filter*L_out, max_len*emb) Toeplitz matrix:
    #   W_unf[f*L_out + l, c*emb + e] = wconv[f, c, e - l]  for 0 <= e - l < K, else 0.
    taps = jnp.stack([jnp.eye(L_out, emb_size, k, dtype=wconv.dtype)
                      for k in range(kernel_size)])                    # (K, L_out, emb)
    w_unf = jnp.einsum("fck,kle->flce", wconv, taps,
                       precision=jax.lax.Precision.HIGHEST)
    w_unf = w_unf.reshape(filter_size * L_out, max_len * emb_size).astype(compute_dtype)
    b_unf = jnp.repeat(bconv, L_out)[:, None].astype(jnp.float32)      # (filter*L_out, 1)
    tableT = emb_table.T.astype(compute_dtype)                         # (emb, vocab)
    w1f = w1.astype(jnp.float32)                                       # (hidden, L_out)
    w2f = w2.astype(jnp.float32)                                       # (2, hidden)
    b1c = b1[:, None].astype(jnp.float32)
    b2c = b2[:, None].astype(jnp.float32)

    # ---- batch tiling: batch is the lane dim; TB samples per grid step ----
    if B <= tile_b:
        TB, B_pad = B, B                       # single full-size tile
    else:
        TB = tile_b                            # multiple of 128 -> lane aligned
        B_pad = ((B + TB - 1) // TB) * TB
    tokT = tokens.T.astype(jnp.int32)          # (max_len, B)
    if B_pad != B:
        tokT = jnp.pad(tokT, ((0, 0), (0, B_pad - B)))   # pad with token 0 (valid id)

    kernel = partial(_fused_kernel, vocab_size=vocab_size, max_len=max_len,
                     L_out=L_out, filter_size=filter_size)

    outT = pl.pallas_call(
        kernel,
        out_shape=jax.ShapeDtypeStruct((2, B_pad), jnp.float32),
        grid_spec=pltpu.PrefetchScalarGridSpec(
            num_scalar_prefetch=0,
            grid=(B_pad // TB,),
            in_specs=[
                pl.BlockSpec((max_len, TB), lambda t: (0, t)),                  # tokens
                pl.BlockSpec((emb_size, vocab_size), lambda t: (0, 0)),         # E^T
                pl.BlockSpec((filter_size * L_out, max_len * emb_size),
                             lambda t: (0, 0)),                                 # conv (unfolded)
                pl.BlockSpec((filter_size * L_out, 1), lambda t: (0, 0)),       # conv bias
                pl.BlockSpec((hidden_size, L_out), lambda t: (0, 0)),           # linear1 W
                pl.BlockSpec((hidden_size, 1), lambda t: (0, 0)),               # linear1 b
                pl.BlockSpec((2, hidden_size), lambda t: (0, 0)),               # linear2 W
                pl.BlockSpec((2, 1), lambda t: (0, 0)),                         # linear2 b
            ],
            out_specs=pl.BlockSpec((2, TB), lambda t: (0, t)),
        ),
        compiler_params=pltpu.CompilerParams(
            dimension_semantics=("parallel",)),
    )(tokT, tableT, w_unf, b_unf, w1f, b1c, w2f, b2c)

    return outT[:, :B].T                       # (B, 2)


def make_params(key, vocab_size, max_len, emb_size, filter_size, kernel_size, hidden_size):
    """Parameters in native PyTorch layouts."""
    ks = jax.random.split(key, 7)
    L_out = emb_size - kernel_size + 1
    emb_table = jax.random.normal(ks[0], (vocab_size, emb_size), jnp.float32) * 0.1
    wconv = jax.random.normal(ks[1], (filter_size, max_len, kernel_size), jnp.float32) * 0.1
    bconv = jax.random.normal(ks[2], (filter_size,), jnp.float32) * 0.1
    w1 = jax.random.normal(ks[3], (hidden_size, L_out), jnp.float32) * 0.1
    b1 = jax.random.normal(ks[4], (hidden_size,), jnp.float32) * 0.1
    w2 = jax.random.normal(ks[5], (2, hidden_size), jnp.float32) * 0.1
    b2 = jax.random.normal(ks[6], (2,), jnp.float32) * 0.1
    return (emb_table, wconv, bconv, w1, b1, w2, b2)


def reference_forward(tokens, params):
    """Pure-JAX reference mirroring the PyTorch forward (eval mode)."""
    emb_table, wconv, bconv, w1, b1, w2, b2 = params
    filter_size, max_len, K = wconv.shape
    emb_size = emb_table.shape[1]
    L_out = emb_size - K + 1
    emb = emb_table[tokens]                                   # (B, max_len, emb)
    conv = sum(
        jnp.einsum("bcl,fc->bfl", emb[:, :, k:k + L_out], wconv[:, :, k],
                   precision=jax.lax.Precision.HIGHEST)
        for k in range(K)
    ) + bconv[None, :, None]                                  # (B, filter, L_out)
    conv = jnp.maximum(conv, 0.0)
    pooled = jnp.max(conv, axis=1)                            # max over filter axis
    h = jnp.maximum(pooled @ w1.T + b1, 0.0)
    return h @ w2.T + b2


if __name__ == "__main__":
    vocab_size, max_len, emb_size = 32, 8, 32
    filter_size, kernel_size, hidden_size = 16, 3, 32

    key = jax.random.PRNGKey(0)
    kp, kt1, kt2 = jax.random.split(key, 3)
    params = make_params(kp, vocab_size, max_len, emb_size,
                         filter_size, kernel_size, hidden_size)

    # Small batch (spec-sized example, single tile).
    B = 2
    tokens = jax.random.randint(kt1, (B, max_len), 0, vocab_size, dtype=jnp.int32)
    out = jax.block_until_ready(original_model_forward(tokens, params))
    ref = reference_forward(tokens, params)
    assert out.shape == (B, 2)
    assert jnp.allclose(out, ref, atol=2e-3, rtol=2e-3), (out, ref)

    # Larger batch exercising the multi-tile grid + padding path (TB = 128 lanes).
    B2 = 300
    tokens2 = jax.random.randint(kt2, (B2, max_len), 0, vocab_size, dtype=jnp.int32)
    out2 = jax.block_until_ready(original_model_forward(tokens2, params, tile_b=128))
    ref2 = reference_forward(tokens2, params)
    assert out2.shape == (B2, 2)
    assert jnp.allclose(out2, ref2, atol=2e-3, rtol=2e-3)

    # bf16 MXU-input path (v6e/v7x fast path); accumulation stays f32.
    out_bf16 = jax.block_until_ready(
        original_model_forward(tokens2, params, compute_dtype=jnp.bfloat16, tile_b=128))
    assert jnp.allclose(out_bf16, ref2, atol=3e-2, rtol=3e-2)

    print("KERNEL_OK")
</pallas_src>

<mosaic_0001>
module attributes {stable_mosaic.version = 11 : i64} {
  func.func @_fused_kernel(%arg0: i32, %arg1: memref<8x2xi32, #tpu.memory_space<vmem>>, %arg2: memref<32x32xf32, #tpu.memory_space<vmem>>, %arg3: memref<480x256xf32, #tpu.memory_space<vmem>>, %arg4: memref<480x1xf32, #tpu.memory_space<vmem>>, %arg5: memref<32x30xf32, #tpu.memory_space<vmem>>, %arg6: memref<32x1xf32, #tpu.memory_space<vmem>>, %arg7: memref<2x32xf32, #tpu.memory_space<vmem>>, %arg8: memref<2x1xf32, #tpu.memory_space<vmem>>, %arg9: memref<2x2xf32, #tpu.memory_space<vmem>>) attributes {dimension_semantics = [#tpu.dimension_semantics<parallel>], iteration_bounds = array<i64: 1>, scalar_prefetch = 0 : i64, scratch_operands = 0 : i64, tpu.core_type = #tpu.core_type<tc>, window_params = [{transform_indices = @transform_0, window_bounds = array<i64: 8, 2>}, {pipeline_mode = #tpu.pipeline_mode<synchronous>, transform_indices = @transform_1, window_bounds = array<i64: 32, 32>}, {pipeline_mode = #tpu.pipeline_mode<synchronous>, transform_indices = @transform_2, window_bounds = array<i64: 480, 256>}, {pipeline_mode = #tpu.pipeline_mode<synchronous>, transform_indices = @transform_3, window_bounds = array<i64: 480, 1>}, {pipeline_mode = #tpu.pipeline_mode<synchronous>, transform_indices = @transform_4, window_bounds = array<i64: 32, 30>}, {pipeline_mode = #tpu.pipeline_mode<synchronous>, transform_indices = @transform_5, window_bounds = array<i64: 32, 1>}, {pipeline_mode = #tpu.pipeline_mode<synchronous>, transform_indices = @transform_6, window_bounds = array<i64: 2, 32>}, {pipeline_mode = #tpu.pipeline_mode<synchronous>, transform_indices = @transform_7, window_bounds = array<i64: 2, 1>}, {transform_indices = @transform_8, window_bounds = array<i64: 2, 2>}]} {
    %c0 = arith.constant 0 : index
    %c0_0 = arith.constant 0 : index
    %0 = vector.load %arg1[%c0, %c0_0] : memref<8x2xi32, #tpu.memory_space<vmem>>, vector<8x2xi32>
    %c0_1 = arith.constant 0 : index
    %c0_2 = arith.constant 0 : index
    %1 = vector.load %arg2[%c0_1, %c0_2] : memref<32x32xf32, #tpu.memory_space<vmem>>, vector<32x32xf32>
    %2 = vector.extract_strided_slice %0 {offsets = [0, 0], sizes = [1, 2], strides = [1, 1]} : vector<8x2xi32> to vector<1x2xi32>
    %3 = tpu.iota {dimensions = array<i32: 0>} : vector<32x2xi32>
    %4 = vector.broadcast %2 : vector<1x2xi32> to vector<32x2xi32>
    %5 = arith.cmpi eq, %3, %4 : vector<32x2xi32>
    %6 = arith.extui %5 : vector<32x2xi1> to vector<32x2xi32>
    %7 = arith.sitofp %6 : vector<32x2xi32> to vector<32x2xf32>
    %cst = arith.constant dense<0.000000e+00> : vector<32x2xf32>
    %8 = tpu.matmul %1, %7, %cst {dimension_numbers = #tpu.dot_dimension_numbers<[1], [0], [0], [1], [0, 0, 1, 1], [], []>} : vector<32x32xf32>, vector<32x2xf32>, vector<32x2xf32> -> vector<32x2xf32>
    %9 = vector.extract_strided_slice %0 {offsets = [1, 0], sizes = [1, 2], strides = [1, 1]} : vector<8x2xi32> to vector<1x2xi32>
    %10 = tpu.iota {dimensions = array<i32: 0>} : vector<32x2xi32>
    %11 = vector.broadcast %9 : vector<1x2xi32> to vector<32x2xi32>
    %12 = arith.cmpi eq, %10, %11 : vector<32x2xi32>
    %13 = arith.extui %12 : vector<32x2xi1> to vector<32x2xi32>
    %14 = arith.sitofp %13 : vector<32x2xi32> to vector<32x2xf32>
    %cst_3 = arith.constant dense<0.000000e+00> : vector<32x2xf32>
    %15 = tpu.matmul %1, %14, %cst_3 {dimension_numbers = #tpu.dot_dimension_numbers<[1], [0], [0], [1], [0, 0, 1, 1], [], []>} : vector<32x32xf32>, vector<32x2xf32>, vector<32x2xf32> -> vector<32x2xf32>
    %16 = vector.extract_strided_slice %0 {offsets = [2, 0], sizes = [1, 2], strides = [1, 1]} : vector<8x2xi32> to vector<1x2xi32>
    %17 = tpu.iota {dimensions = array<i32: 0>} : vector<32x2xi32>
    %18 = vector.broadcast %16 : vector<1x2xi32> to vector<32x2xi32>
    %19 = arith.cmpi eq, %17, %18 : vector<32x2xi32>
    %20 = arith.extui %19 : vector<32x2xi1> to vector<32x2xi32>
    %21 = arith.sitofp %20 : vector<32x2xi32> to vector<32x2xf32>
    %cst_4 = arith.constant dense<0.000000e+00> : vector<32x2xf32>
    %22 = tpu.matmul %1, %21, %cst_4 {dimension_numbers = #tpu.dot_dimension_numbers<[1], [0], [0], [1], [0, 0, 1, 1], [], []>} : vector<32x32xf32>, vector<32x2xf32>, vector<32x2xf32> -> vector<32x2xf32>
    %23 = vector.extract_strided_slice %0 {offsets = [3, 0], sizes = [1, 2], strides = [1, 1]} : vector<8x2xi32> to vector<1x2xi32>
    %24 = tpu.iota {dimensions = array<i32: 0>} : vector<32x2xi32>
    %25 = vector.broadcast %23 : vector<1x2xi32> to vector<32x2xi32>
    %26 = arith.cmpi eq, %24, %25 : vector<32x2xi32>
    %27 = arith.extui %26 : vector<32x2xi1> to vector<32x2xi32>
    %28 = arith.sitofp %27 : vector<32x2xi32> to vector<32x2xf32>
    %cst_5 = arith.constant dense<0.000000e+00> : vector<32x2xf32>
    %29 = tpu.matmul %1, %28, %cst_5 {dimension_numbers = #tpu.dot_dimension_numbers<[1], [0], [0], [1], [0, 0, 1, 1], [], []>} : vector<32x32xf32>, vector<32x2xf32>, vector<32x2xf32> -> vector<32x2xf32>
    %30 = vector.extract_strided_slice %0 {offsets = [4, 0], sizes = [1, 2], strides = [1, 1]} : vector<8x2xi32> to vector<1x2xi32>
    %31 = tpu.iota {dimensions = array<i32: 0>} : vector<32x2xi32>
    %32 = vector.broadcast %30 : vector<1x2xi32> to vector<32x2xi32>
    %33 = arith.cmpi eq, %31, %32 : vector<32x2xi32>
    %34 = arith.extui %33 : vector<32x2xi1> to vector<32x2xi32>
    %35 = arith.sitofp %34 : vector<32x2xi32> to vector<32x2xf32>
    %cst_6 = arith.constant dense<0.000000e+00> : vector<32x2xf32>
    %36 = tpu.matmul %1, %35, %cst_6 {dimension_numbers = #tpu.dot_dimension_numbers<[1], [0], [0], [1], [0, 0, 1, 1], [], []>} : vector<32x32xf32>, vector<32x2xf32>, vector<32x2xf32> -> vector<32x2xf32>
    %37 = vector.extract_strided_slice %0 {offsets = [5, 0], sizes = [1, 2], strides = [1, 1]} : vector<8x2xi32> to vector<1x2xi32>
    %38 = tpu.iota {dimensions = array<i32: 0>} : vector<32x2xi32>
    %39 = vector.broadcast %37 : vector<1x2xi32> to vector<32x2xi32>
    %40 = arith.cmpi eq, %38, %39 : vector<32x2xi32>
    %41 = arith.extui %40 : vector<32x2xi1> to vector<32x2xi32>
    %42 = arith.sitofp %41 : vector<32x2xi32> to vector<32x2xf32>
    %cst_7 = arith.constant dense<0.000000e+00> : vector<32x2xf32>
    %43 = tpu.matmul %1, %42, %cst_7 {dimension_numbers = #tpu.dot_dimension_numbers<[1], [0], [0], [1], [0, 0, 1, 1], [], []>} : vector<32x32xf32>, vector<32x2xf32>, vector<32x2xf32> -> vector<32x2xf32>
    %44 = vector.extract_strided_slice %0 {offsets = [6, 0], sizes = [1, 2], strides = [1, 1]} : vector<8x2xi32> to vector<1x2xi32>
    %45 = tpu.iota {dimensions = array<i32: 0>} : vector<32x2xi32>
    %46 = vector.broadcast %44 : vector<1x2xi32> to vector<32x2xi32>
    %47 = arith.cmpi eq, %45, %46 : vector<32x2xi32>
    %48 = arith.extui %47 : vector<32x2xi1> to vector<32x2xi32>
    %49 = arith.sitofp %48 : vector<32x2xi32> to vector<32x2xf32>
    %cst_8 = arith.constant dense<0.000000e+00> : vector<32x2xf32>
    %50 = tpu.matmul %1, %49, %cst_8 {dimension_numbers = #tpu.dot_dimension_numbers<[1], [0], [0], [1], [0, 0, 1, 1], [], []>} : vector<32x32xf32>, vector<32x2xf32>, vector<32x2xf32> -> vector<32x2xf32>
    %51 = vector.extract_strided_slice %0 {offsets = [7, 0], sizes = [1, 2], strides = [1, 1]} : vector<8x2xi32> to vector<1x2xi32>
    %52 = tpu.iota {dimensions = array<i32: 0>} : vector<32x2xi32>
    %53 = vector.broadcast %51 : vector<1x2xi32> to vector<32x2xi32>
    %54 = arith.cmpi eq, %52, %53 : vector<32x2xi32>
    %55 = arith.extui %54 : vector<32x2xi1> to vector<32x2xi32>
    %56 = arith.sitofp %55 : vector<32x2xi32> to vector<32x2xf32>
    %cst_9 = arith.constant dense<0.000000e+00> : vector<32x2xf32>
    %57 = tpu.matmul %1, %56, %cst_9 {dimension_numbers = #tpu.dot_dimension_numbers<[1], [0], [0], [1], [0, 0, 1, 1], [], []>} : vector<32x32xf32>, vector<32x2xf32>, vector<32x2xf32> -> vector<32x2xf32>
    %58 = tpu.concatenate %8, %15, %22, %29, %36, %43, %50, %57 in 0 : vector<32x2xf32>, vector<32x2xf32>, vector<32x2xf32>, vector<32x2xf32>, vector<32x2xf32>, vector<32x2xf32>, vector<32x2xf32>, vector<32x2xf32> -> vector<256x2xf32>
    %c0_10 = arith.constant 0 : index
    %c0_11 = arith.constant 0 : index
    %59 = vector.load %arg3[%c0_10, %c0_11] : memref<480x256xf32, #tpu.memory_space<vmem>>, vector<480x256xf32>
    %cst_12 = arith.constant dense<0.000000e+00> : vector<480x2xf32>
    %60 = tpu.matmul %59, %58, %cst_12 {dimension_numbers = #tpu.dot_dimension_numbers<[1], [0], [0], [1], [0, 0, 1, 1], [], []>} : vector<480x256xf32>, vector<256x2xf32>, vector<480x2xf32> -> vector<480x2xf32>
    %c0_13 = arith.constant 0 : index
    %c0_14 = arith.constant 0 : index
    %61 = vector.load %arg4[%c0_13, %c0_14] : memref<480x1xf32, #tpu.memory_space<vmem>>, vector<480x1xf32>
    %62 = vector.broadcast %61 : vector<480x1xf32> to vector<480x2xf32>
    %63 = arith.addf %60, %62 : vector<480x2xf32>
    %cst_15 = arith.constant 0.000000e+00 : f32
    %64 = vector.broadcast %cst_15 : f32 to vector<480x2xf32>
    %65 = arith.maximumf %63, %64 : vector<480x2xf32>
    %66 = vector.extract_strided_slice %65 {offsets = [0, 0], sizes = [30, 2], strides = [1, 1]} : vector<480x2xf32> to vector<30x2xf32>
    %67 = vector.extract_strided_slice %65 {offsets = [30, 0], sizes = [30, 2], strides = [1, 1]} : vector<480x2xf32> to vector<30x2xf32>
    %68 = arith.maximumf %66, %67 : vector<30x2xf32>
    %69 = vector.extract_strided_slice %65 {offsets = [60, 0], sizes = [30, 2], strides = [1, 1]} : vector<480x2xf32> to vector<30x2xf32>
    %70 = arith.maximumf %68, %69 : vector<30x2xf32>
    %71 = vector.extract_strided_slice %65 {offsets = [90, 0], sizes = [30, 2], strides = [1, 1]} : vector<480x2xf32> to vector<30x2xf32>
    %72 = arith.maximumf %70, %71 : vector<30x2xf32>
    %73 = vector.extract_strided_slice %65 {offsets = [120, 0], sizes = [30, 2], strides = [1, 1]} : vector<480x2xf32> to vector<30x2xf32>
    %74 = arith.maximumf %72, %73 : vector<30x2xf32>
    %75 = vector.extract_strided_slice %65 {offsets = [150, 0], sizes = [30, 2], strides = [1, 1]} : vector<480x2xf32> to vector<30x2xf32>
    %76 = arith.maximumf %74, %75 : vector<30x2xf32>
    %77 = vector.extract_strided_slice %65 {offsets = [180, 0], sizes = [30, 2], strides = [1, 1]} : vector<480x2xf32> to vector<30x2xf32>
    %78 = arith.maximumf %76, %77 : vector<30x2xf32>
    %79 = vector.extract_strided_slice %65 {offsets = [210, 0], sizes = [30, 2], strides = [1, 1]} : vector<480x2xf32> to vector<30x2xf32>
    %80 = arith.maximumf %78, %79 : vector<30x2xf32>
    %81 = vector.extract_strided_slice %65 {offsets = [240, 0], sizes = [30, 2], strides = [1, 1]} : vector<480x2xf32> to vector<30x2xf32>
    %82 = arith.maximumf %80, %81 : vector<30x2xf32>
    %83 = vector.extract_strided_slice %65 {offsets = [270, 0], sizes = [30, 2], strides = [1, 1]} : vector<480x2xf32> to vector<30x2xf32>
    %84 = arith.maximumf %82, %83 : vector<30x2xf32>
    %85 = vector.extract_strided_slice %65 {offsets = [300, 0], sizes = [30, 2], strides = [1, 1]} : vector<480x2xf32> to vector<30x2xf32>
    %86 = arith.maximumf %84, %85 : vector<30x2xf32>
    %87 = vector.extract_strided_slice %65 {offsets = [330, 0], sizes = [30, 2], strides = [1, 1]} : vector<480x2xf32> to vector<30x2xf32>
    %88 = arith.maximumf %86, %87 : vector<30x2xf32>
    %89 = vector.extract_strided_slice %65 {offsets = [360, 0], sizes = [30, 2], strides = [1, 1]} : vector<480x2xf32> to vector<30x2xf32>
    %90 = arith.maximumf %88, %89 : vector<30x2xf32>
    %91 = vector.extract_strided_slice %65 {offsets = [390, 0], sizes = [30, 2], strides = [1, 1]} : vector<480x2xf32> to vector<30x2xf32>
    %92 = arith.maximumf %90, %91 : vector<30x2xf32>
    %93 = vector.extract_strided_slice %65 {offsets = [420, 0], sizes = [30, 2], strides = [1, 1]} : vector<480x2xf32> to vector<30x2xf32>
    %94 = arith.maximumf %92, %93 : vector<30x2xf32>
    %95 = vector.extract_strided_slice %65 {offsets = [450, 0], sizes = [30, 2], strides = [1, 1]} : vector<480x2xf32> to vector<30x2xf32>
    %96 = arith.maximumf %94, %95 : vector<30x2xf32>
    %c0_16 = arith.constant 0 : index
    %c0_17 = arith.constant 0 : index
    %97 = vector.load %arg5[%c0_16, %c0_17] : memref<32x30xf32, #tpu.memory_space<vmem>>, vector<32x30xf32>
    %cst_18 = arith.constant dense<0.000000e+00> : vector<32x2xf32>
    %98 = tpu.matmul %97, %96, %cst_18 {dimension_numbers = #tpu.dot_dimension_numbers<[1], [0], [0], [1], [0, 0, 1, 1], [], []>} : vector<32x30xf32>, vector<30x2xf32>, vector<32x2xf32> -> vector<32x2xf32>
    %c0_19 = arith.constant 0 : index
    %c0_20 = arith.constant 0 : index
    %99 = vector.load %arg6[%c0_19, %c0_20] : memref<32x1xf32, #tpu.memory_space<vmem>>, vector<32x1xf32>
    %100 = vector.broadcast %99 : vector<32x1xf32> to vector<32x2xf32>
    %101 = arith.addf %98, %100 : vector<32x2xf32>
    %cst_21 = arith.constant 0.000000e+00 : f32
    %102 = vector.broadcast %cst_21 : f32 to vector<32x2xf32>
    %103 = arith.maximumf %101, %102 : vector<32x2xf32>
    %c0_22 = arith.constant 0 : index
    %c0_23 = arith.constant 0 : index
    %104 = vector.load %arg7[%c0_22, %c0_23] : memref<2x32xf32, #tpu.memory_space<vmem>>, vector<2x32xf32>
    %cst_24 = arith.constant dense<0.000000e+00> : vector<2x2xf32>
    %105 = tpu.matmul %104, %103, %cst_24 {dimension_numbers = #tpu.dot_dimension_numbers<[1], [0], [0], [1], [0, 0, 1, 1], [], []>} : vector<2x32xf32>, vector<32x2xf32>, vector<2x2xf32> -> vector<2x2xf32>
    %c0_25 = arith.constant 0 : index
    %c0_26 = arith.constant 0 : index
    %106 = vector.load %arg8[%c0_25, %c0_26] : memref<2x1xf32, #tpu.memory_space<vmem>>, vector<2x1xf32>
    %107 = vector.broadcast %106 : vector<2x1xf32> to vector<2x2xf32>
    %108 = arith.addf %105, %107 : vector<2x2xf32>
    %c0_27 = arith.constant 0 : index
    %c0_28 = arith.constant 0 : index
    %109 = vector.load %arg9[%c0_27, %c0_28] : memref<2x2xf32, #tpu.memory_space<vmem>>, vector<2x2xf32>
    tpu.vector_store %arg9[%c0_27, %c0_28], %108 {strides = array<i32>} : memref<2x2xf32, #tpu.memory_space<vmem>>, vector<2x2xf32>,
    return
  }
  func.func @transform_0(%arg0: i32) -> (i32, i32) {
    %c0_i32 = arith.constant 0 : i32
    %c0_i32_0 = arith.constant 0 : i32
    return %c0_i32, %arg0 : i32, i32
  }
  func.func @transform_1(%arg0: i32) -> (i32, i32) {
    %c0_i32 = arith.constant 0 : i32
    %c0_i32_0 = arith.constant 0 : i32
    %c0_i32_1 = arith.constant 0 : i32
    return %c0_i32, %c0_i32_0 : i32, i32
  }
  func.func @transform_2(%arg0: i32) -> (i32, i32) {
    %c0_i32 = arith.constant 0 : i32
    %c0_i32_0 = arith.constant 0 : i32
    %c0_i32_1 = arith.constant 0 : i32
    return %c0_i32, %c0_i32_0 : i32, i32
  }
  func.func @transform_3(%arg0: i32) -> (i32, i32) {
    %c0_i32 = arith.constant 0 : i32
    %c0_i32_0 = arith.constant 0 : i32
    %c0_i32_1 = arith.constant 0 : i32
    return %c0_i32, %c0_i32_0 : i32, i32
  }
  func.func @transform_4(%arg0: i32) -> (i32, i32) {
    %c0_i32 = arith.constant 0 : i32
    %c0_i32_0 = arith.constant 0 : i32
    %c0_i32_1 = arith.constant 0 : i32
    return %c0_i32, %c0_i32_0 : i32, i32
  }
  func.func @transform_5(%arg0: i32) -> (i32, i32) {
    %c0_i32 = arith.constant 0 : i32
    %c0_i32_0 = arith.constant 0 : i32
    %c0_i32_1 = arith.constant 0 : i32
    return %c0_i32, %c0_i32_0 : i32, i32
  }
  func.func @transform_6(%arg0: i32) -> (i32, i32) {
    %c0_i32 = arith.constant 0 : i32
    %c0_i32_0 = arith.constant 0 : i32
    %c0_i32_1 = arith.constant 0 : i32
    return %c0_i32, %c0_i32_0 : i32, i32
  }
  func.func @transform_7(%arg0: i32) -> (i32, i32) {
    %c0_i32 = arith.constant 0 : i32
    %c0_i32_0 = arith.constant 0 : i32
    %c0_i32_1 = arith.constant 0 : i32
    return %c0_i32, %c0_i32_0 : i32, i32
  }
  func.func @transform_8(%arg0: i32) -> (i32, i32) {
    %c0_i32 = arith.constant 0 : i32
    %c0_i32_0 = arith.constant 0 : i32
    return %c0_i32, %arg0 : i32, i32
  }
}

</mosaic_0001>

<bundles_post_ra>
// kernel: original_model_forward.1
= control target key start
LH: loop header
LB: loop body
LE: loop exit
PB: predicated region body
PF: predicated region fallthrough
CT: control target
= control target key end

     0   :  { %v34_v0 = vlaneseq  ;;  %vm55_vm0 = vcmask 261120   ;;  %v2727_v15 = vmov 1.0|1.0   ;;  %v3961_v39 = vmov 0.0|0.0   ;;  %s3952_s0 = inlined_call_operand.vmem [shape: s32[8,2], index: 0, kind: input, shape index: {}]   ;;  %s3953_s1 = inlined_call_operand.vmem [shape: f32[32,32], index: 1, kind: input, shape index: {}]   ;;  %s3954_s3 = inlined_call_operand.vmem [shape: f32[480,1], index: 3, kind: input, shape index: {}]   ;;  %s3955_s2 = inlined_call_operand.vmem [shape: f32[480,256], index: 2, kind: input, shape index: {}]   ;;  %s3956_s5 = inlined_call_operand.vmem [shape: f32[32,1], index: 5, kind: input, shape index: {}]   ;;  %s3957_s7 = inlined_call_operand.vmem [shape: f32[2,1], index: 7, kind: input, shape index: {}]   ;;  %s3958_s4 = inlined_call_operand.vmem [shape: f32[32,30], index: 4, kind: input, shape index: {}]   ;;  %s3959_s6 = inlined_call_operand.vmem [shape: f32[2,32], index: 6, kind: input, shape index: {}]   ;;  %s3960_s8 = inlined_call_operand.vmem [shape: f32[2,2], index: 8, kind: output, shape index: {}]  }
   0x1   :  { %v2781_v1 = vld [vmem:[%s3953_s1] sm:$0xff]  ;;  %v2856_v22 = vld [vmem:[%s3953_s1 + $0x8] sm:$0xff]  ;;  %v2865_v24 = vld [vmem:[%s3953_s1 + $0x10] sm:$0xff]  ;;  %v2729_v40 = vmov 0  }
   0x2   :  { %v2783_v2 = vshrl.u32 %v34_v0, 7  ;;  %2430 = vmatprep.mubr.msk.f32.mxu0 %vm55_vm0, %v2781_v1  ;;  %2444 = vmatprep.mubr.msk.f32.mxu1 %vm55_vm0, %v2781_v1  ;;  %v2792_v3 = vld [vmem:[%s3952_s0] sm:$0xff]  ;;  %v2893_v28 = vld [vmem:[%s3953_s1 + $0x18] sm:$0xff]  ;;  %v985_v42 = vld [vmem:[%s3954_s3 + $0x28] sm:$0xff] }
   0x3   :  { %2725 = vset.pattern.permute.xlu0 %v2729_v40  ;;  %v983_v41 = vld [vmem:[%s3954_s3 + $0x18] sm:$0xff]  ;;  %2726 = vset.pattern.permute.xlu1 %v2729_v40  ;;  %v984_v43 = vld [vmem:[%s3954_s3 + $0x20] sm:$0xff]  ;;  %v989_v46 = vld [vmem:[%s3954_s3 + $0x48] sm:$0xff] }
   0x4   :  { %v2795_v4 = vadd.s32 8, %v2783_v2  ;;  %v41_v5 = vsub.s32 0, %v2783_v2  ;;  %v2799_v6 = vadd.s32 16, %v2783_v2  ;;  %v2802_v7 = vadd.s32 24, %v2783_v2  ;;  %1057 = vperm.xlu0 %2725, %v983_v41   ;;  %1067 = vperm.xlu1 %2726, %v985_v42   ;;  %v987_v44 = vld [vmem:[%s3954_s3 + $0x38] sm:$0xff]  ;;  %v988_v45 = vld [vmem:[%s3954_s3 + $0x40] sm:$0xff] }
   0x5   :  { %v155_v8 = vsub.s32 1, %v2783_v2  ;;  %v256_v9 = vsub.s32 2, %v2783_v2  ;;  %v357_v10 = vsub.s32 3, %v2783_v2  ;;  %v458_v17 = vsub.s32 4, %v2783_v2  ;;  %v980_v47 = vld [vmem:[%s3954_s3] sm:$0xff]  ;;  %v981_v48 = vld [vmem:[%s3954_s3 + $0x8] sm:$0xff] }
   0x6   :  { %v42_v11 = vrot.slane %v2792_v3, %v41_v5  ;;  %v559_v19 = vsub.s32 5, %v2783_v2  ;;  %v660_v27 = vsub.s32 6, %v2783_v2  ;;  %v761_v30 = vsub.s32 7, %v2783_v2  ;;  %v986_v49 = vld [vmem:[%s3954_s3 + $0x30] sm:$0xff]  ;;  %v991_v50 = vld [vmem:[%s3954_s3 + $0x58] sm:$0xff]  ;;  %v992_v51 = vld [vmem:[%s3954_s3 + $0x60] sm:$0xff] }
   0x7   :  { %v156_v12 = vrot.slane %v2792_v3, %v155_v8  ;;  %v257_v13 = vrot.slane %v2792_v3, %v256_v9  ;;  %v358_v14 = vrot.slane %v2792_v3, %v357_v10  ;;  %v459_v21 = vrot.slane %v2792_v3, %v458_v17  ;;  %v993_v52 = vld [vmem:[%s3954_s3 + $0x68] sm:$0xff]  ;;  %v990_v53 = vld [vmem:[%s3954_s3 + $0x50] sm:$0xff]  ;;  %v999_v59 = vld [vmem:[%s3954_s3 + $0x98] sm:$0xff] }
   0x8   :  { %vm43_vm1 = vcmp.eq.s32.totalorder %v2783_v2, %v42_v11  ;;  %vm44_vm2 = vcmp.eq.s32.totalorder %v2795_v4, %v42_v11  ;;  %vm45_vm3 = vcmp.eq.s32.totalorder %v2799_v6, %v42_v11  ;;  %vm46_vm4 = vcmp.eq.s32.totalorder %v2802_v7, %v42_v11  ;;  %1062 = vperm.xlu0 %2725, %v984_v43   ;;  %v982_v54 = vld [vmem:[%s3954_s3 + $0x10] sm:$0xff]  ;;  %v861_v55 = vld [vmem:[%s3955_s2 + $0x8] sm:$0xff]  ;;  %v1000_v60 = vld [vmem:[%s3954_s3 + $0xa0] sm:$0xff] }
   0x9   :  { %vm2559_vm5 = vmpackc.low %vm44_vm2, %vm43_vm1  ;;  %vm157_vm6 = vcmp.eq.s32.totalorder %v2783_v2, %v156_v12  ;;  %vm158_vm7 = vcmp.eq.s32.totalorder %v2795_v4, %v156_v12  ;;  %vm159_vm8 = vcmp.eq.s32.totalorder %v2799_v6, %v156_v12  ;;  %vm160_vm9 = vcmp.eq.s32.totalorder %v2802_v7, %v156_v12  ;;  %1077 = vperm.xlu1 %2726, %v987_v44   ;;  %v925_v56 = vld [vmem:[%s3955_s2 + $0x208] sm:$0xff]  ;;  %v994_v57 = vld [vmem:[%s3954_s3 + $0x70] sm:$0xff] }
   0xa   :  { %2560 = vmatprep.subr.msk.bf16.mxu0 %vm2559_vm5, %v2727_v15  ;;  %vm2820_vm10 = vmpackc.low %vm46_vm4, %vm45_vm3  ;;  %vm258_vm11 = vcmp.eq.s32.totalorder %v2783_v2, %v257_v13  ;;  %vm259_vm12 = vcmp.eq.s32.totalorder %v2795_v4, %v257_v13  ;;  %vm359_vm15 = vcmp.eq.s32.totalorder %v2783_v2, %v358_v14  ;;  %vm360_vm1 = vcmp.eq.s32.totalorder %v2795_v4, %v358_v14  ;;  %v998_v58 = vld [vmem:[%s3954_s3 + $0x90] sm:$0xff]  ;;  %v995_v61 = vld [vmem:[%s3954_s3 + $0x78] sm:$0xff] }
   0xb   :  { %2562 = vmatpush3.bf16.msk.msra.mxu0 %vm2559_vm5, %v2727_v15  ;;  %vm2567_vm13 = vmpackc.low %vm158_vm7, %vm157_vm6  ;;  %vm260_vm3 = vcmp.eq.s32.totalorder %v2799_v6, %v257_v13  ;;  %vm261_vm4 = vcmp.eq.s32.totalorder %v2802_v7, %v257_v13  ;;  %vm361_vm6 = vcmp.eq.s32.totalorder %v2799_v6, %v358_v14  ;;  %vm362_vm7 = vcmp.eq.s32.totalorder %v2802_v7, %v358_v14  ;;  %v996_v62 = vld [vmem:[%s3954_s3 + $0x80] sm:$0xff]  ;;  %v1002_v63 = vld [vmem:[%s3954_s3 + $0xb0] sm:$0xff] }
   0xc   :  { %2564 = vmatprep.subr.msk.bf16.mxu0 %vm2820_vm10, %v2727_v15  ;;  %2568 = vmatprep.subr.msk.bf16.mxu1 %vm2567_vm13, %v2727_v15  ;;  %vm2832_vm14 = vmpackc.low %vm160_vm9, %vm159_vm8  ;;  %v560_v25 = vrot.slane %v2792_v3, %v559_v19  ;;  %vm460_vm9 = vcmp.eq.s32.totalorder %v2783_v2, %v459_v21  ;;  %v661_v32 = vrot.slane %v2792_v3, %v660_v27  ;;  %v1003_v0 = vld [vmem:[%s3954_s3 + $0xb8] sm:$0xff]  ;;  %v1008_v5 = vld [vmem:[%s3954_s3 + $0xe0] sm:$0xff] }
   0xd   :  { %2570 = vmatpush3.bf16.msk.msra.mxu1 %vm2567_vm13, %v2727_v15  ;;  %vm2840_vm2 = vmpackc.low %vm259_vm12, %vm258_vm11  ;;  %v762_v34 = vrot.slane %v2792_v3, %v761_v30  ;;  %1082 = vperm.xlu0 %2725, %v988_v45   ;;  %v1006_v3 = vld [vmem:[%s3954_s3 + $0xd0] sm:$0xff]  ;;  %v1009_v8 = vld [vmem:[%s3954_s3 + $0xe8] sm:$0xff] }
   0xe   :  { %2572 = vmatprep.subr.msk.bf16.mxu1 %vm2832_vm14, %v2727_v15  ;;  %vm2858_vm5 = vmpackc.low %vm360_vm1, %vm359_vm15  ;;  %vm561_vm12 = vcmp.eq.s32.totalorder %v2783_v2, %v560_v25  ;;  %vm562_vm13 = vcmp.eq.s32.totalorder %v2795_v4, %v560_v25  ;;  %vm462_vm15 = vcmp.eq.s32.totalorder %v2799_v6, %v459_v21  ;;  %vm463_vm1 = vcmp.eq.s32.totalorder %v2802_v7, %v459_v21  ;;  %v1013_v9 = vld [vmem:[%s3954_s3 + $0x108] sm:$0xff]  ;;  %v1014_v10 = vld [vmem:[%s3954_s3 + $0x110] sm:$0xff] }
   0xf   :  { %2566 = vmatpush3.bf16.msk.msra.mxu0 %vm2820_vm10, %v2727_v15  ;;  %vm2876_vm8 = vmpackc.low %vm261_vm4, %vm260_vm3  ;;  %vm461_vm10 = vcmp.eq.s32.totalorder %v2795_v4, %v459_v21  ;;  %vm563_vm3 = vcmp.eq.s32.totalorder %v2799_v6, %v560_v25  ;;  %vm564_vm4 = vcmp.eq.s32.totalorder %v2802_v7, %v560_v25  ;;  %1087 = vperm.xlu1 %2726, %v989_v46   ;;  %v1015_v11 = vld [vmem:[%s3954_s3 + $0x118] sm:$0xff]  ;;  %v1010_v12 = vld [vmem:[%s3954_s3 + $0xf0] sm:$0xff] }
  0x10   :  { %2576 = vmatprep.subr.msk.bf16.mxu0 %vm2840_vm2, %v2727_v15  ;;  %vm2898_vm11 = vmpackc.low %vm362_vm7, %vm361_vm6  ;;  %vm662_vm6 = vcmp.eq.s32.totalorder %v2783_v2, %v661_v32  ;;  %vm663_vm7 = vcmp.eq.s32.totalorder %v2795_v4, %v661_v32  ;;  %v1011_v13 = vld [vmem:[%s3954_s3 + $0xf8] sm:$0xff]  ;;  %v1017_v14 = vld [vmem:[%s3954_s3 + $0x128] sm:$0xff] }
  0x11   :  { %2574 = vmatpush3.bf16.msk.msra.mxu1 %vm2832_vm14, %v2727_v15  ;;  %vm2915_vm14 = vmpackc.low %vm461_vm10, %vm460_vm9  ;;  %vm763_vm9 = vcmp.eq.s32.totalorder %v2783_v2, %v762_v34  ;;  %vm764_vm10 = vcmp.eq.s32.totalorder %v2795_v4, %v762_v34  ;;  %1042 = vperm.xlu0 %2725, %v980_v47   ;;  %v1001_v2 = vld [vmem:[%s3954_s3 + $0xa8] sm:$0xff]  ;;  %v1007_v4 = vld [vmem:[%s3954_s3 + $0xd8] sm:$0xff] }
  0x12   :  { %2431 = vmatmul.mubr.msk.f32.vlgmr.msra.gmra.mrb[0].mxu0 %vm55_vm0, %v2856_v22  ;;  %2584 = vmatprep.subr.msk.bf16.mxu1 %vm2858_vm5, %v2727_v15  ;;  %v1019_v16 = vld [vmem:[%s3954_s3 + $0x138] sm:$0xff]  ;;  %v1016_v17 = vld [vmem:[%s3954_s3 + $0x120] sm:$0xff]  ;;  %v1021_v18 = vld [vmem:[%s3954_s3 + $0x148] sm:$0xff] }
  0x13   :  { %2433 = vmatprep.mubr.msk.f32.mxu0 %vm55_vm0, %v2865_v24  ;;  %2578 = vmatpush3.bf16.msk.msra.mxu0 %vm2840_vm2, %v2727_v15  ;;  %vm2932_vm2 = vmpackc.low %vm562_vm13, %vm561_vm12  ;;  %vm664_vm12 = vcmp.eq.s32.totalorder %v2799_v6, %v661_v32  ;;  %vm665_vm13 = vcmp.eq.s32.totalorder %v2802_v7, %v661_v32  ;;  %v1022_v19 = vld [vmem:[%s3954_s3 + $0x150] sm:$0xff]  ;;  %v1023_v20 = vld [vmem:[%s3954_s3 + $0x158] sm:$0xff] }
  0x14   :  { %2445 = vmatmul.mubr.msk.f32.vlgmr.msra.gmra.mrb[0].mxu1 %vm55_vm0, %v2856_v22  ;;  %2580 = vmatprep.subr.msk.bf16.mxu0 %vm2876_vm8, %v2727_v15  ;;  %v1012_v21 = vld [vmem:[%s3954_s3 + $0x100] sm:$0xff]  ;;  %v1029_v30 = vld [vmem:[%s3954_s3 + $0x188] sm:$0xff]  ;;  %v1030_v33 = vld [vmem:[%s3954_s3 + $0x190] sm:$0xff] }
  0x15   :  { %2447 = vmatprep.mubr.msk.f32.mxu1 %vm55_vm0, %v2865_v24  ;;  %2586 = vmatpush3.bf16.msk.msra.mxu1 %vm2858_vm5, %v2727_v15  ;;  %vm2949_vm5 = vmpackc.low %vm463_vm1, %vm462_vm15  ;;  %vm765_vm15 = vcmp.eq.s32.totalorder %v2799_v6, %v762_v34  ;;  %vm766_vm1 = vcmp.eq.s32.totalorder %v2802_v7, %v762_v34  ;;  %v997_v6 = vld [vmem:[%s3954_s3 + $0x88] sm:$0xff]  ;;  %v1024_v23 = vld [vmem:[%s3954_s3 + $0x160] sm:$0xff] }
  0x16   :  { %2434 = vmatmul.mubr.msk.f32.gmra.mrb[2].mxu0 %vm55_vm0, %v2893_v28  ;;  %2588 = vmatprep.subr.msk.bf16.mxu1 %vm2898_vm11, %v2727_v15  ;;  %v1005_v7 = vld [vmem:[%s3954_s3 + $0xc8] sm:$0xff]  ;;  %v1028_v25 = vld [vmem:[%s3954_s3 + $0x180] sm:$0xff]  ;;  %v1026_v42 = vld [vmem:[%s3954_s3 + $0x170] sm:$0xff] }
  0x17   :  { %2582 = vmatpush3.bf16.msk.msra.mxu0 %vm2876_vm8, %v2727_v15  ;;  %2458 = vmatprep.mubr.msk.f32.mxu0 %vm55_vm0, %v2781_v1  ;;  %vm2965_vm8 = vmpackc.low %vm564_vm4, %vm563_vm3  ;;  %v1025_v38 = vld [vmem:[%s3954_s3 + $0x168] sm:$0xff]  ;;  %v1032_v47 = vld [vmem:[%s3954_s3 + $0x1a0] sm:$0xff]  ;;  %vm1770_vm4 = vcmask 1041408  }
  0x18   :  { %2448 = vmatmul.mubr.msk.f32.gmra.mrb[2].mxu1 %vm55_vm0, %v2893_v28  ;;  %2592 = vmatprep.subr.msk.bf16.mxu0 %vm2915_vm14, %v2727_v15  ;;  %vm2619_vm3 = vmpackc.low %vm766_vm1, %vm765_vm15 }
  0x19   :  { %2590 = vmatpush3.bf16.msk.msra.mxu1 %vm2898_vm11, %v2727_v15  ;;  %2472 = vmatprep.mubr.msk.f32.mxu1 %vm55_vm0, %v2781_v1  ;;  %vm2981_vm11 = vmpackc.low %vm663_vm7, %vm662_vm6  ;;  %vm1792_vm6 = vcmask 1043456   ;;  %vm1813_vm7 = vcmask 1045504  }
  0x1a   :  { %2459 = vmatmul.mubr.msk.f32.vlgmr.msra.gmra.mrb[4].mxu0 %vm55_vm0, %v2856_v22  ;;  %2600 = vmatprep.subr.msk.bf16.mxu1 %vm2932_vm2, %v2727_v15 }
  0x1b   :  { %2461 = vmatprep.mubr.msk.f32.mxu0 %vm55_vm0, %v2865_v24  ;;  %2594 = vmatpush3.bf16.msk.msra.mxu0 %vm2915_vm14, %v2727_v15  ;;  %vm2997_vm14 = vmpackc.low %vm764_vm10, %vm763_vm9  ;;  %vm2731_vm10 = vmmov 0  }
  0x1c   :  { %2473 = vmatmul.mubr.msk.f32.vlgmr.msra.gmra.mrb[4].mxu1 %vm55_vm0, %v2856_v22  ;;  %2596 = vmatprep.subr.msk.bf16.mxu0 %vm2949_vm5, %v2727_v15 }
  0x1d   :  { %2475 = vmatprep.mubr.msk.f32.mxu1 %vm55_vm0, %v2865_v24  ;;  %2602 = vmatpush3.bf16.msk.msra.mxu1 %vm2932_vm2, %v2727_v15  ;;  %vm2611_vm2 = vmpackc.low %vm665_vm13, %vm664_vm12 }
  0x1e   :  { %2462 = vmatmul.mubr.msk.f32.gmra.mrb[6].mxu0 %vm55_vm0, %v2893_v28  ;;  %2604 = vmatprep.subr.msk.bf16.mxu1 %vm2965_vm8, %v2727_v15 }
  0x1f   :  { %2598 = vmatpush3.bf16.msk.msra.mxu0 %vm2949_vm5, %v2727_v15  ;;  %2486 = vmatprep.mubr.msk.f32.mxu0 %vm55_vm0, %v2781_v1  ;;  %vm2052_vm5 = vcmask 244736  }
  0x20   :  { %2476 = vmatmul.mubr.msk.f32.gmra.mrb[6].mxu1 %vm55_vm0, %v2893_v28  ;;  %2608 = vmatprep.subr.msk.bf16.mxu0 %vm2981_vm11, %v2727_v15 }
  0x21   :  { %2606 = vmatpush3.bf16.msk.msra.mxu1 %vm2965_vm8, %v2727_v15  ;;  %2500 = vmatprep.mubr.msk.f32.mxu1 %vm55_vm0, %v2781_v1  ;;  %vm2730_vm8 = vmmov 1  }
  0x22   :  { %2487 = vmatmul.mubr.msk.f32.vlgmr.msra.gmra.mrb[8].mxu0 %vm55_vm0, %v2856_v22  ;;  %2616 = vmatprep.subr.msk.bf16.mxu1 %vm2997_vm14, %v2727_v15  ;;  %vm2676_vm9 = vmpackc.low %vm1813_vm7, %vm2730_vm8 }
  0x23   :  { %2489 = vmatprep.mubr.msk.f32.mxu0 %vm55_vm0, %v2865_v24  ;;  %2610 = vmatpush3.bf16.msk.msra.mxu0 %vm2981_vm11, %v2727_v15  ;;  %vm2237_vm11 = vcmask 9216  }
  0x24   :  { %2501 = vmatmul.mubr.msk.f32.vlgmr.msra.gmra.mrb[8].mxu1 %vm55_vm0, %v2856_v22  ;;  %2612 = vmatprep.subr.msk.bf16.mxu0 %vm2611_vm2, %v2727_v15 }
  0x25   :  { %2503 = vmatprep.mubr.msk.f32.mxu1 %vm55_vm0, %v2865_v24  ;;  %2618 = vmatpush3.bf16.msk.msra.mxu1 %vm2997_vm14, %v2727_v15 }
  0x26   :  { %2490 = vmatmul.mubr.msk.f32.gmra.mrb[10].mxu0 %vm55_vm0, %v2893_v28  ;;  %2620 = vmatprep.subr.msk.bf16.mxu1 %vm2619_vm3, %v2727_v15 }
  0x27   :  { %2614 = vmatpush3.bf16.msk.msra.mxu0 %vm2611_vm2, %v2727_v15  ;;  %2514 = vmatprep.mubr.msk.f32.mxu0 %vm55_vm0, %v2781_v1 }
  0x28   :  { %2504 = vmatmul.mubr.msk.f32.gmra.mrb[10].mxu1 %vm55_vm0, %v2893_v28  ;;  %2623 = vmatprep.subr.bf16.mxu0 %v3961_v39 }
  0x29   :  { %2622 = vmatpush3.bf16.msk.msra.mxu1 %vm2619_vm3, %v2727_v15  ;;  %2528 = vmatprep.mubr.msk.f32.mxu1 %vm55_vm0, %v2781_v1  ;;  %v1004_v1 = vld [vmem:[%s3954_s3 + $0xc0] sm:$0xff]  ;;  %v1018_v15 = vld [vmem:[%s3954_s3 + $0x130] sm:$0xff] }
  0x2a   :  { %2515 = vmatmul.mubr.msk.f32.vlgmr.msra.gmra.mrb[12].mxu0 %vm55_vm0, %v2856_v22  ;;  %2687 = vmatprep.subr.bf16.mxu1 %v3961_v39 }
  0x2b   :  { %2517 = vmatprep.mubr.msk.f32.mxu0 %vm55_vm0, %v2865_v24  ;;  %1047 = vperm.xlu1 %2726, %v981_v48  }
  0x2c   :  { %2529 = vmatmul.mubr.msk.f32.vlgmr.msra.gmra.mrb[12].mxu1 %vm55_vm0, %v2856_v22  ;;  %1072 = vperm.xlu0 %2725, %v986_v49   ;;  %v1020_v22 = vld [vmem:[%s3954_s3 + $0x140] sm:$0xff] }
  0x2d   :  { %2531 = vmatprep.mubr.msk.f32.mxu1 %vm55_vm0, %v2865_v24 }
  0x2e   :  { %2518 = vmatmul.mubr.msk.f32.gmra.mrb[14].mxu0 %vm55_vm0, %v2893_v28 }
  0x2f   :  { %1097 = vperm.xlu1 %2726, %v991_v50   ;;  %1404 = vmatprep.mubr.f32.mxu0 %v861_v55  ;;  %v1033_v50 = vld [vmem:[%s3954_s3 + $0x1a8] sm:$0xff]  ;;  %v1034_v55 = vld [vmem:[%s3954_s3 + $0x1b0] sm:$0xff] }
  0x30   :  { %2532 = vmatmul.mubr.msk.f32.gmra.mrb[14].mxu1 %vm55_vm0, %v2893_v28  ;;  %1102 = vperm.xlu0 %2725, %v992_v51  }
  0x31   :  { %1564 = vmatprep.mubr.f32.mxu1 %v925_v56 }
  0x33   :  { %1107 = vperm.xlu1 %2726, %v993_v52  }
  0x34   :  { %1092 = vperm.xlu0 %2725, %v990_v53  }
  0x37   :  { %1052 = vperm.xlu1 %2726, %v982_v54  }
  0x38   :  { %1112 = vperm.xlu0 %2725, %v994_v57  }
  0x3b   :  { %1132 = vperm.xlu1 %2726, %v998_v58   ;;  %v1031_v58 = vld [vmem:[%s3954_s3 + $0x198] sm:$0xff] }
  0x3c   :  { %1137 = vperm.xlu0 %2725, %v999_v59  }
  0x3f   :  { %1142 = vperm.xlu1 %2726, %v1000_v60  }
  0x40   :  { %1117 = vperm.xlu0 %2725, %v995_v61  }
  0x43   :  { %1122 = vperm.xlu1 %2726, %v996_v62  }
  0x44   :  { %1152 = vperm.xlu0 %2725, %v1002_v63   ;;  %v1036_v63 = vld [vmem:[%s3954_s3 + $0x1c0] sm:$0xff] }
  0x47   :  { %1157 = vperm.xlu1 %2726, %v1003_v0  }
  0x48   :  { %1162 = vperm.xlu0 %2725, %v1004_v1  }
  0x4b   :  { %1147 = vperm.xlu1 %2726, %v1001_v2   ;;  %v1037_v2 = vld [vmem:[%s3954_s3 + $0x1c8] sm:$0xff] }
  0x4c   :  { %1172 = vperm.xlu0 %2725, %v1006_v3  }
  0x4f   :  { %1177 = vperm.xlu1 %2726, %v1007_v4  }
  0x50   :  { %1182 = vperm.xlu0 %2725, %v1008_v5  }
  0x53   :  { %1127 = vperm.xlu1 %2726, %v997_v6  }
  0x54   :  { %1167 = vperm.xlu0 %2725, %v1005_v7   ;;  %v1038_v7 = vld [vmem:[%s3954_s3 + $0x1d0] sm:$0xff] }
  0x57   :  { %1187 = vperm.xlu1 %2726, %v1009_v8  }
  0x58   :  { %1207 = vperm.xlu0 %2725, %v1013_v9  }
  0x5b   :  { %1212 = vperm.xlu1 %2726, %v1014_v10   ;;  %v1027_v10 = vld [vmem:[%s3954_s3 + $0x178] sm:$0xff] }
  0x5c   :  { %1217 = vperm.xlu0 %2725, %v1015_v11  }
  0x5f   :  { %1192 = vperm.xlu1 %2726, %v1010_v12  }
  0x60   :  { %1197 = vperm.xlu0 %2725, %v1011_v13  }
  0x63   :  { %1227 = vperm.xlu1 %2726, %v1017_v14  }
  0x64   :  { %1232 = vperm.xlu0 %2725, %v1018_v15   ;;  %v1035_v15 = vld [vmem:[%s3954_s3 + $0x1b8] sm:$0xff] }
  0x67   :  { %1237 = vperm.xlu1 %2726, %v1019_v16  }
  0x68   :  { %1222 = vperm.xlu0 %2725, %v1016_v17  }
  0x6b   :  { %1247 = vperm.xlu1 %2726, %v1021_v18   ;;  %v1039_v18 = vld [vmem:[%s3954_s3 + $0x1d8] sm:$0xff] }
  0x6c   :  { %1252 = vperm.xlu0 %2725, %v1022_v19  }
  0x6f   :  { %1257 = vperm.xlu1 %2726, %v1023_v20  }
  0x70   :  { %1202 = vperm.xlu0 %2725, %v1012_v21  }
  0x73   :  { %1242 = vperm.xlu1 %2726, %v1020_v22  }
  0x74   :  { %1262 = vperm.xlu0 %2725, %v1024_v23   ;;  %v2028_v23 = vld [vmem:[%s3956_s5] sm:$0xff] }
  0x77   :  { %1282 = vperm.xlu1 %2726, %v1028_v25   ;;  %v2029_v25 = vld [vmem:[%s3956_s5 + $0x8] sm:$0xff] }
  0x78   :  { %1287 = vperm.xlu0 %2725, %v1029_v30   ;;  %v924_v30 = vld [vmem:[%s3955_s2 + $0x200] sm:$0xff] }
  0x7b   :  { %1292 = vperm.xlu1 %2726, %v1030_v33   ;;  %v862_v33 = vld [vmem:[%s3955_s2 + $0x10] sm:$0xff] }
  0x7c   :  { %1267 = vperm.xlu0 %2725, %v1025_v38   ;;  %v928_v38 = vld [vmem:[%s3955_s2 + $0x220] sm:$0xff] }
  0x7f   :  { %1272 = vperm.xlu1 %2726, %v1026_v42   ;;  %v866_v42 = vld [vmem:[%s3955_s2 + $0x30] sm:$0xff] }
  0x80   :  { %1302 = vperm.xlu0 %2725, %v1032_v47   ;;  %v932_v47 = vld [vmem:[%s3955_s2 + $0x240] sm:$0xff] }
  0x83   :  { %1307 = vperm.xlu1 %2726, %v1033_v50   ;;  %v870_v50 = vld [vmem:[%s3955_s2 + $0x50] sm:$0xff] }
  0x84   :  { %1312 = vperm.xlu0 %2725, %v1034_v55   ;;  %v936_v55 = vld [vmem:[%s3955_s2 + $0x260] sm:$0xff] }
  0x87   :  { %1297 = vperm.xlu1 %2726, %v1031_v58   ;;  %v874_v58 = vld [vmem:[%s3955_s2 + $0x70] sm:$0xff] }
  0x88   :  { %1322 = vperm.xlu0 %2725, %v1036_v63   ;;  %v940_v63 = vld [vmem:[%s3955_s2 + $0x280] sm:$0xff] }
  0x8b   :  { %1327 = vperm.xlu1 %2726, %v1037_v2   ;;  %v878_v2 = vld [vmem:[%s3955_s2 + $0x90] sm:$0xff] }
  0x8c   :  { %1332 = vperm.xlu0 %2725, %v1038_v7   ;;  %v944_v7 = vld [vmem:[%s3955_s2 + $0x2a0] sm:$0xff] }
  0x8f   :  { %1277 = vperm.xlu1 %2726, %v1027_v10   ;;  %v882_v10 = vld [vmem:[%s3955_s2 + $0xb0] sm:$0xff] }
  0x90   :  { %1317 = vperm.xlu0 %2725, %v1035_v15   ;;  %v948_v15 = vld [vmem:[%s3955_s2 + $0x2c0] sm:$0xff] }
  0x93   :  { %1337 = vperm.xlu1 %2726, %v1039_v18   ;;  %v886_v18 = vld [vmem:[%s3955_s2 + $0xd0] sm:$0xff] }
  0x94   :  { %2034 = vperm.xlu0 %2725, %v2028_v23   ;;  %v952_v23 = vld [vmem:[%s3955_s2 + $0x2e0] sm:$0xff] }
  0x97   :  { %2039 = vperm.xlu1 %2726, %v2029_v25   ;;  %v955_v25 = vld [vmem:[%s3955_s2 + $0x2f8] sm:$0xff] }
  0xe5   :  { %v2432_v24 = vpop.f32.mrb[0].mxu0 }
  0xe6   :  { %v134_v26 = vpop.f32.mrb[1].mxu0 }
  0xe7   :  { %v2624_v27 = vpack.c.bf16 %v2432_v24, %v134_v26  ;;  %v2446_v28 = vpop.f32.mrb[0].mxu1  ;;  %v2030_v26 = vld [vmem:[%s3956_s5 + $0x10] sm:$0xff] }
  0xe8   :  { %v235_v29 = vpop.f32.mrb[1].mxu1  ;;  %2044 = vperm.xlu0 %2725, %v2030_v26   ;;  %v890_v26 = vld [vmem:[%s3955_s2 + $0xf0] sm:$0xff] }
  0xe9   :  { %v2435_v31 = vpop.f32.mrb[2].mxu0  ;;  %2625 = vmatpush1.bf16.msra.mxu0 %v2624_v27  ;;  %2703 = vmatpush1.bf16.msra.mxu1 %v2624_v27  ;;  %v2630_v32 = vpack.c.bf16 %v2446_v28, %v235_v29  ;;  %v2031_v27 = vld [vmem:[%s3956_s5 + $0x18] sm:$0xff]  ;;  %v2158_v28 = vld [vmem:[%s3957_s7] sm:$0x3] }
  0xea   :  { %v144_v34 = vpop.f32.mrb[3].mxu0  ;;  %2626 = vmatprep.subr.bf16.mxu0 %v3961_v39  ;;  %2688 = vmatprep.subr.bf16.mxu1 %v3961_v39  ;;  %v860_v29 = vld [vmem:[%s3955_s2] sm:$0xff] }
  0xeb   :  { %v2627_v35 = vpack.c.bf16 %v2435_v31, %v144_v34  ;;  %v2449_v36 = vpop.f32.mrb[2].mxu1  ;;  %2049 = vperm.xlu1 %2726, %v2031_v27   ;;  %v863_v31 = vld [vmem:[%s3955_s2 + $0x18] sm:$0xff]  ;;  %v926_v34 = vld [vmem:[%s3955_s2 + $0x210] sm:$0xff] }
  0xec   :  { %v245_v37 = vpop.f32.mrb[3].mxu1  ;;  %2161 = vperm.xlu0 %2725, %v2158_v28   ;;  %v954_v27 = vld [vmem:[%s3955_s2 + $0x2f0] sm:$0xff]  ;;  %v893_v28 = vld [vmem:[%s3955_s2 + $0x108] sm:$0xff] }
  0xed   :  { %2628 = vmatpush1.bf16.msra.mxu0 %v2627_v35  ;;  %2704 = vmatpush1.bf16.msra.mxu1 %v2627_v35  ;;  %v2633_v40 = vpack.c.bf16 %v2449_v36, %v245_v37  ;;  %v2460_v41 = vpop.f32.mrb[4].mxu0  ;;  %v865_v35 = vld [vmem:[%s3955_s2 + $0x28] sm:$0xff]  ;;  %v864_v37 = vld [vmem:[%s3955_s2 + $0x20] sm:$0xff] }
  0xee   :  { %2629 = vmatprep.subr.bf16.mxu0 %v3961_v39  ;;  %2689 = vmatprep.subr.bf16.mxu1 %v3961_v39  ;;  %v336_v43 = vpop.f32.mrb[5].mxu0  ;;  %v929_v36 = vld [vmem:[%s3955_s2 + $0x228] sm:$0xff] }
  0xef   :  { %v2636_v44 = vpack.c.bf16 %v2460_v41, %v336_v43  ;;  %v2474_v45 = vpop.f32.mrb[4].mxu1  ;;  %v931_v41 = vld [vmem:[%s3955_s2 + $0x238] sm:$0xff]  ;;  %v930_v43 = vld [vmem:[%s3955_s2 + $0x230] sm:$0xff] }
  0xf0   :  { %v437_v46 = vpop.f32.mrb[5].mxu1 }
  0xf1   :  { %2631 = vmatpush1.bf16.msra.mxu0 %v2630_v32  ;;  %2705 = vmatpush1.bf16.msra.mxu1 %v2630_v32  ;;  %v2463_v48 = vpop.f32.mrb[6].mxu0  ;;  %v2642_v49 = vpack.c.bf16 %v2474_v45, %v437_v46  ;;  %v927_v32 = vld [vmem:[%s3955_s2 + $0x218] sm:$0xff]  ;;  %v933_v45 = vld [vmem:[%s3955_s2 + $0x248] sm:$0xff]  ;;  %v868_v46 = vld [vmem:[%s3955_s2 + $0x40] sm:$0xff] }
  0xf2   :  { %2632 = vmatprep.subr.bf16.mxu0 %v3961_v39  ;;  %2690 = vmatprep.subr.bf16.mxu1 %v3961_v39  ;;  %v346_v51 = vpop.f32.mrb[7].mxu0 }
  0xf3   :  { %v2639_v52 = vpack.c.bf16 %v2463_v48, %v346_v51  ;;  %v2477_v53 = vpop.f32.mrb[6].mxu1  ;;  %v871_v48 = vld [vmem:[%s3955_s2 + $0x58] sm:$0xff]  ;;  %v934_v51 = vld [vmem:[%s3955_s2 + $0x250] sm:$0xff] }
  0xf4   :  { %v447_v54 = vpop.f32.mrb[7].mxu1 }
  0xf5   :  { %2634 = vmatpush1.bf16.msra.mxu0 %v2633_v40  ;;  %2706 = vmatpush1.bf16.msra.mxu1 %v2633_v40  ;;  %v2645_v56 = vpack.c.bf16 %v2477_v53, %v447_v54  ;;  %v2488_v57 = vpop.f32.mrb[8].mxu0  ;;  %v867_v40 = vld [vmem:[%s3955_s2 + $0x38] sm:$0xff]  ;;  %v937_v53 = vld [vmem:[%s3955_s2 + $0x268] sm:$0xff]  ;;  %v872_v54 = vld [vmem:[%s3955_s2 + $0x60] sm:$0xff] }
  0xf6   :  { %2635 = vmatprep.subr.bf16.mxu0 %v3961_v39  ;;  %2691 = vmatprep.subr.bf16.mxu1 %v3961_v39  ;;  %v538_v59 = vpop.f32.mrb[9].mxu0 }
  0xf7   :  { %v2648_v60 = vpack.c.bf16 %v2488_v57, %v538_v59  ;;  %v2502_v61 = vpop.f32.mrb[8].mxu1  ;;  %v939_v57 = vld [vmem:[%s3955_s2 + $0x278] sm:$0xff]  ;;  %v938_v59 = vld [vmem:[%s3955_s2 + $0x270] sm:$0xff] }
  0xf8   :  { %v639_v62 = vpop.f32.mrb[9].mxu1 }
  0xf9   :  { %2637 = vmatpush1.bf16.msra.mxu0 %v2636_v44  ;;  %2707 = vmatpush1.bf16.msra.mxu1 %v2636_v44  ;;  %v2491_v0 = vpop.f32.mrb[10].mxu0  ;;  %v3235_v1 = vpack.c.bf16 %v2502_v61, %v639_v62  ;;  %v869_v44 = vld [vmem:[%s3955_s2 + $0x48] sm:$0xff]  ;;  %v876_v62 = vld [vmem:[%s3955_s2 + $0x80] sm:$0xff] }
  0xfa   :  { %2638 = vmatprep.subr.bf16.mxu0 %v3961_v39  ;;  %2692 = vmatprep.subr.bf16.mxu1 %v3961_v39  ;;  %v548_v3 = vpop.f32.mrb[11].mxu0  ;;  %v941_v61 = vld [vmem:[%s3955_s2 + $0x288] sm:$0xff] }
  0xfb   :  { %v2651_v4 = vpack.c.bf16 %v2491_v0, %v548_v3  ;;  %v2505_v5 = vpop.f32.mrb[10].mxu1  ;;  %v879_v0 = vld [vmem:[%s3955_s2 + $0x98] sm:$0xff]  ;;  %v942_v3 = vld [vmem:[%s3955_s2 + $0x290] sm:$0xff] }
  0xfc   :  { %v649_v6 = vpop.f32.mrb[11].mxu1 }
  0xfd   :  { %2640 = vmatpush1.bf16.msra.mxu0 %v2639_v52  ;;  %2708 = vmatpush1.bf16.msra.mxu1 %v2639_v52  ;;  %v2657_v8 = vpack.c.bf16 %v2505_v5, %v649_v6  ;;  %v2516_v9 = vpop.f32.mrb[12].mxu0  ;;  %v873_v52 = vld [vmem:[%s3955_s2 + $0x68] sm:$0xff]  ;;  %v880_v6 = vld [vmem:[%s3955_s2 + $0xa0] sm:$0xff] }
  0xfe   :  { %2641 = vmatprep.subr.bf16.mxu0 %v3961_v39  ;;  %2693 = vmatprep.subr.bf16.mxu1 %v3961_v39  ;;  %v740_v11 = vpop.f32.mrb[13].mxu0  ;;  %v945_v5 = vld [vmem:[%s3955_s2 + $0x2a8] sm:$0xff] }
  0xff   :  { %v2660_v12 = vpack.c.bf16 %v2516_v9, %v740_v11  ;;  %v2530_v13 = vpop.f32.mrb[12].mxu1  ;;  %v947_v9 = vld [vmem:[%s3955_s2 + $0x2b8] sm:$0xff]  ;;  %v946_v11 = vld [vmem:[%s3955_s2 + $0x2b0] sm:$0xff] }
 0x100   :  { %v841_v14 = vpop.f32.mrb[13].mxu1 }
 0x101   :  { %2643 = vmatpush1.bf16.msra.mxu0 %v2642_v49  ;;  %2709 = vmatpush1.bf16.msra.mxu1 %v2642_v49  ;;  %v2519_v16 = vpop.f32.mrb[14].mxu0  ;;  %v2666_v17 = vpack.c.bf16 %v2530_v13, %v841_v14  ;;  %v935_v49 = vld [vmem:[%s3955_s2 + $0x258] sm:$0xff]  ;;  %v949_v13 = vld [vmem:[%s3955_s2 + $0x2c8] sm:$0xff]  ;;  %v884_v14 = vld [vmem:[%s3955_s2 + $0xc0] sm:$0xff] }
 0x102   :  { %2644 = vmatprep.subr.bf16.mxu0 %v3961_v39  ;;  %2694 = vmatprep.subr.bf16.mxu1 %v3961_v39  ;;  %v750_v19 = vpop.f32.mrb[15].mxu0 }
 0x103   :  { %v2663_v20 = vpack.c.bf16 %v2519_v16, %v750_v19  ;;  %v2533_v21 = vpop.f32.mrb[14].mxu1  ;;  %v887_v16 = vld [vmem:[%s3955_s2 + $0xd8] sm:$0xff]  ;;  %v950_v19 = vld [vmem:[%s3955_s2 + $0x2d0] sm:$0xff] }
 0x104   :  { %v851_v22 = vpop.f32.mrb[15].mxu1 }
 0x105   :  { %2646 = vmatpush1.bf16.msra.mxu0 %v2645_v56  ;;  %2710 = vmatpush1.bf16.msra.mxu1 %v2645_v56  ;;  %v2669_v24 = vpack.c.bf16 %v2533_v21, %v851_v22  ;;  %v875_v56 = vld [vmem:[%s3955_s2 + $0x78] sm:$0xff]  ;;  %v953_v21 = vld [vmem:[%s3955_s2 + $0x2e8] sm:$0xff]  ;;  %v888_v22 = vld [vmem:[%s3955_s2 + $0xe0] sm:$0xff] }
 0x106   :  { %2647 = vmatprep.subr.bf16.mxu0 %v3961_v39  ;;  %2695 = vmatprep.subr.bf16.mxu1 %v3961_v39 }
 0x109   :  { %2649 = vmatpush1.bf16.msra.mxu0 %v2648_v60  ;;  %2711 = vmatpush1.bf16.msra.mxu1 %v2648_v60  ;;  %v877_v60 = vld [vmem:[%s3955_s2 + $0x88] sm:$0xff] }
 0x10a   :  { %2650 = vmatprep.subr.bf16.mxu0 %v3961_v39  ;;  %2696 = vmatprep.subr.bf16.mxu1 %v3961_v39 }
 0x10d   :  { %2652 = vmatpush1.bf16.msra.mxu0 %v2651_v4  ;;  %2712 = vmatpush1.bf16.msra.mxu1 %v2651_v4  ;;  %v881_v4 = vld [vmem:[%s3955_s2 + $0xa8] sm:$0xff] }
 0x10e   :  { %2653 = vmatprep.subr.bf16.mxu0 %v3961_v39  ;;  %2697 = vmatprep.subr.bf16.mxu1 %v3961_v39 }
 0x111   :  { %2655 = vmatpush1.bf16.msra.mxu0 %v3235_v1  ;;  %2713 = vmatpush1.bf16.msra.mxu1 %v3235_v1  ;;  %v943_v1 = vld [vmem:[%s3955_s2 + $0x298] sm:$0xff] }
 0x112   :  { %2656 = vmatprep.subr.bf16.mxu0 %v3961_v39  ;;  %2698 = vmatprep.subr.bf16.mxu1 %v3961_v39 }
 0x115   :  { %2658 = vmatpush1.bf16.msra.mxu0 %v2657_v8  ;;  %2714 = vmatpush1.bf16.msra.mxu1 %v2657_v8  ;;  %v883_v8 = vld [vmem:[%s3955_s2 + $0xb8] sm:$0xff] }
 0x116   :  { %2659 = vmatprep.subr.bf16.mxu0 %v3961_v39  ;;  %2699 = vmatprep.subr.bf16.mxu1 %v3961_v39 }
 0x119   :  { %2661 = vmatpush1.bf16.msra.mxu0 %v2660_v12  ;;  %2715 = vmatpush1.bf16.msra.mxu1 %v2660_v12  ;;  %v885_v12 = vld [vmem:[%s3955_s2 + $0xc8] sm:$0xff] }
 0x11a   :  { %2662 = vmatprep.subr.bf16.mxu0 %v3961_v39  ;;  %2700 = vmatprep.subr.bf16.mxu1 %v3961_v39 }
 0x11d   :  { %2664 = vmatpush1.bf16.msra.mxu0 %v2663_v20  ;;  %2716 = vmatpush1.bf16.msra.mxu1 %v2663_v20  ;;  %v889_v20 = vld [vmem:[%s3955_s2 + $0xe8] sm:$0xff] }
 0x11e   :  { %2665 = vmatprep.subr.bf16.mxu0 %v3961_v39  ;;  %2701 = vmatprep.subr.bf16.mxu1 %v3961_v39 }
 0x121   :  { %2667 = vmatpush1.bf16.msra.mxu0 %v2666_v17  ;;  %2717 = vmatpush1.bf16.msra.mxu1 %v2666_v17  ;;  %v951_v17 = vld [vmem:[%s3955_s2 + $0x2d8] sm:$0xff] }
 0x122   :  { %2668 = vmatprep.subr.bf16.mxu0 %v3961_v39  ;;  %2702 = vmatprep.subr.bf16.mxu1 %v3961_v39 }
 0x125   :  { %2670 = vmatpush1.bf16.msra.mxu0 %v2669_v24  ;;  %2718 = vmatpush1.bf16.msra.mxu1 %v2669_v24  ;;  %v891_v24 = vld [vmem:[%s3955_s2 + $0xf8] sm:$0xff] }
 0x128   :  { %1405 = vmatmul.mubr.f32.vlgmr.msra.gmra.mrb[16].mxu0 %v860_v29  ;;  %1565 = vmatmul.mubr.f32.vlgmr.msra.gmra.mrb[16].mxu1 %v924_v30  ;;  %v957_v29 = vld [vmem:[%s3955_s2 + $0x308] sm:$0xff]  ;;  %v892_v30 = vld [vmem:[%s3955_s2 + $0x100] sm:$0xff] }
 0x129   :  { %1409 = vmatprep.mubr.f32.mxu0 %v863_v31  ;;  %1569 = vmatprep.mubr.f32.mxu1 %v927_v32  ;;  %v956_v31 = vld [vmem:[%s3955_s2 + $0x300] sm:$0xff]  ;;  %v895_v32 = vld [vmem:[%s3955_s2 + $0x118] sm:$0xff] }
 0x12c   :  { %1410 = vmatmul.mubr.f32.gmra.mrb[18].mxu0 %v862_v33  ;;  %1570 = vmatmul.mubr.f32.gmra.mrb[18].mxu1 %v926_v34  ;;  %v959_v33 = vld [vmem:[%s3955_s2 + $0x318] sm:$0xff]  ;;  %v894_v34 = vld [vmem:[%s3955_s2 + $0x110] sm:$0xff] }
 0x12d   :  { %1414 = vmatprep.mubr.f32.mxu0 %v865_v35  ;;  %1574 = vmatprep.mubr.f32.mxu1 %v929_v36  ;;  %v958_v35 = vld [vmem:[%s3955_s2 + $0x310] sm:$0xff]  ;;  %v897_v36 = vld [vmem:[%s3955_s2 + $0x128] sm:$0xff] }
 0x130   :  { %1415 = vmatmul.mubr.f32.gmra.mrb[20].mxu0 %v864_v37  ;;  %1575 = vmatmul.mubr.f32.gmra.mrb[20].mxu1 %v928_v38  ;;  %v961_v37 = vld [vmem:[%s3955_s2 + $0x328] sm:$0xff]  ;;  %v896_v38 = vld [vmem:[%s3955_s2 + $0x120] sm:$0xff] }
 0x131   :  { %1419 = vmatprep.mubr.f32.mxu0 %v867_v40  ;;  %1579 = vmatprep.mubr.f32.mxu1 %v931_v41  ;;  %v960_v40 = vld [vmem:[%s3955_s2 + $0x320] sm:$0xff]  ;;  %v899_v41 = vld [vmem:[%s3955_s2 + $0x138] sm:$0xff] }
 0x134   :  { %1420 = vmatmul.mubr.f32.gmra.mrb[22].mxu0 %v866_v42  ;;  %1580 = vmatmul.mubr.f32.gmra.mrb[22].mxu1 %v930_v43  ;;  %v963_v42 = vld [vmem:[%s3955_s2 + $0x338] sm:$0xff]  ;;  %v898_v43 = vld [vmem:[%s3955_s2 + $0x130] sm:$0xff] }
 0x135   :  { %1424 = vmatprep.mubr.f32.mxu0 %v869_v44  ;;  %1584 = vmatprep.mubr.f32.mxu1 %v933_v45  ;;  %v962_v44 = vld [vmem:[%s3955_s2 + $0x330] sm:$0xff]  ;;  %v901_v45 = vld [vmem:[%s3955_s2 + $0x148] sm:$0xff] }
 0x138   :  { %1425 = vmatmul.mubr.f32.gmra.mrb[24].mxu0 %v868_v46  ;;  %1585 = vmatmul.mubr.f32.gmra.mrb[24].mxu1 %v932_v47  ;;  %v965_v46 = vld [vmem:[%s3955_s2 + $0x348] sm:$0xff]  ;;  %v900_v47 = vld [vmem:[%s3955_s2 + $0x140] sm:$0xff] }
 0x139   :  { %1429 = vmatprep.mubr.f32.mxu0 %v871_v48  ;;  %1589 = vmatprep.mubr.f32.mxu1 %v935_v49  ;;  %v964_v48 = vld [vmem:[%s3955_s2 + $0x340] sm:$0xff]  ;;  %v903_v49 = vld [vmem:[%s3955_s2 + $0x158] sm:$0xff] }
 0x13c   :  { %1430 = vmatmul.mubr.f32.gmra.mrb[26].mxu0 %v870_v50  ;;  %1590 = vmatmul.mubr.f32.gmra.mrb[26].mxu1 %v934_v51  ;;  %v967_v50 = vld [vmem:[%s3955_s2 + $0x358] sm:$0xff]  ;;  %v902_v51 = vld [vmem:[%s3955_s2 + $0x150] sm:$0xff] }
 0x13d   :  { %1434 = vmatprep.mubr.f32.mxu0 %v873_v52  ;;  %1594 = vmatprep.mubr.f32.mxu1 %v937_v53  ;;  %v966_v52 = vld [vmem:[%s3955_s2 + $0x350] sm:$0xff]  ;;  %v905_v53 = vld [vmem:[%s3955_s2 + $0x168] sm:$0xff] }
 0x140   :  { %1435 = vmatmul.mubr.f32.gmra.mrb[28].mxu0 %v872_v54  ;;  %1595 = vmatmul.mubr.f32.gmra.mrb[28].mxu1 %v936_v55  ;;  %v969_v54 = vld [vmem:[%s3955_s2 + $0x368] sm:$0xff]  ;;  %v904_v55 = vld [vmem:[%s3955_s2 + $0x160] sm:$0xff] }
 0x141   :  { %1439 = vmatprep.mubr.f32.mxu0 %v875_v56  ;;  %1599 = vmatprep.mubr.f32.mxu1 %v939_v57  ;;  %v968_v56 = vld [vmem:[%s3955_s2 + $0x360] sm:$0xff]  ;;  %v907_v57 = vld [vmem:[%s3955_s2 + $0x178] sm:$0xff] }
 0x144   :  { %1440 = vmatmul.mubr.f32.gmra.mrb[30].mxu0 %v874_v58  ;;  %1600 = vmatmul.mubr.f32.gmra.mrb[30].mxu1 %v938_v59  ;;  %v971_v58 = vld [vmem:[%s3955_s2 + $0x378] sm:$0xff]  ;;  %v3567_v59 = vpop.permute.xlu0 %1057 }
 0x145   :  { %1444 = vmatprep.mubr.f32.mxu0 %v877_v60  ;;  %1604 = vmatprep.mubr.f32.mxu1 %v941_v61  ;;  %v3569_v60 = vpop.permute.xlu1 %1067  ;;  %v906_v61 = vld [vmem:[%s3955_s2 + $0x170] sm:$0xff] }
 0x148   :  { %1445 = vmatmul.mubr.f32.gmra.mrb[32].mxu0 %v876_v62  ;;  %1605 = vmatmul.mubr.f32.gmra.mrb[32].mxu1 %v940_v63  ;;  %v970_v62 = vld [vmem:[%s3955_s2 + $0x370] sm:$0xff]  ;;  %v909_v63 = vld [vmem:[%s3955_s2 + $0x188] sm:$0xff] }
 0x149   :  { %1449 = vmatprep.mubr.f32.mxu0 %v879_v0  ;;  %1609 = vmatprep.mubr.f32.mxu1 %v943_v1  ;;  %v973_v0 = vld [vmem:[%s3955_s2 + $0x388] sm:$0xff]  ;;  %v908_v1 = vld [vmem:[%s3955_s2 + $0x180] sm:$0xff] }
 0x14c   :  { %1450 = vmatmul.mubr.f32.gmra.mrb[34].mxu0 %v878_v2  ;;  %1610 = vmatmul.mubr.f32.gmra.mrb[34].mxu1 %v942_v3  ;;  %v972_v2 = vld [vmem:[%s3955_s2 + $0x380] sm:$0xff]  ;;  %v911_v3 = vld [vmem:[%s3955_s2 + $0x198] sm:$0xff] }
 0x14d   :  { %1454 = vmatprep.mubr.f32.mxu0 %v881_v4  ;;  %1614 = vmatprep.mubr.f32.mxu1 %v945_v5  ;;  %v975_v4 = vld [vmem:[%s3955_s2 + $0x398] sm:$0xff]  ;;  %v3595_v5 = vpop.permute.xlu0 %1062 }
 0x150   :  { %1455 = vmatmul.mubr.f32.gmra.mrb[36].mxu0 %v880_v6  ;;  %1615 = vmatmul.mubr.f32.gmra.mrb[36].mxu1 %v944_v7  ;;  %v3597_v6 = vpop.permute.xlu1 %1077  ;;  %v910_v7 = vld [vmem:[%s3955_s2 + $0x190] sm:$0xff] }
 0x151   :  { %1459 = vmatprep.mubr.f32.mxu0 %v883_v8  ;;  %1619 = vmatprep.mubr.f32.mxu1 %v947_v9  ;;  %v974_v8 = vld [vmem:[%s3955_s2 + $0x390] sm:$0xff]  ;;  %v913_v9 = vld [vmem:[%s3955_s2 + $0x1a8] sm:$0xff] }
 0x154   :  { %1460 = vmatmul.mubr.f32.gmra.mrb[38].mxu0 %v882_v10  ;;  %1620 = vmatmul.mubr.f32.gmra.mrb[38].mxu1 %v946_v11  ;;  %v977_v10 = vld [vmem:[%s3955_s2 + $0x3a8] sm:$0xff]  ;;  %v3611_v11 = vpop.permute.xlu0 %1082 }
 0x155   :  { %1464 = vmatprep.mubr.f32.mxu0 %v885_v12  ;;  %1624 = vmatprep.mubr.f32.mxu1 %v949_v13  ;;  %v3613_v12 = vpop.permute.xlu1 %1087  ;;  %v912_v13 = vld [vmem:[%s3955_s2 + $0x1a0] sm:$0xff] }
 0x158   :  { %1465 = vmatmul.mubr.f32.gmra.mrb[40].mxu0 %v884_v14  ;;  %1625 = vmatmul.mubr.f32.gmra.mrb[40].mxu1 %v948_v15  ;;  %v976_v14 = vld [vmem:[%s3955_s2 + $0x3a0] sm:$0xff]  ;;  %v915_v15 = vld [vmem:[%s3955_s2 + $0x1b8] sm:$0xff] }
 0x159   :  { %1469 = vmatprep.mubr.f32.mxu0 %v887_v16  ;;  %1629 = vmatprep.mubr.f32.mxu1 %v951_v17  ;;  %v979_v16 = vld [vmem:[%s3955_s2 + $0x3b8] sm:$0xff]  ;;  %v914_v17 = vld [vmem:[%s3955_s2 + $0x1b0] sm:$0xff] }
 0x15c   :  { %1470 = vmatmul.mubr.f32.gmra.mrb[42].mxu0 %v886_v18  ;;  %1630 = vmatmul.mubr.f32.gmra.mrb[42].mxu1 %v950_v19  ;;  %v978_v18 = vld [vmem:[%s3955_s2 + $0x3b0] sm:$0xff]  ;;  %v917_v19 = vld [vmem:[%s3955_s2 + $0x1c8] sm:$0xff] }
 0x15d   :  { %1474 = vmatprep.mubr.f32.mxu0 %v889_v20  ;;  %1634 = vmatprep.mubr.f32.mxu1 %v953_v21  ;;  %v3636_v20 = vpop.permute.xlu0 %1042  ;;  %v3638_v21 = vpop.permute.xlu1 %1047 }
 0x160   :  { %1475 = vmatmul.mubr.f32.gmra.mrb[44].mxu0 %v888_v22  ;;  %1635 = vmatmul.mubr.f32.gmra.mrb[44].mxu1 %v952_v23  ;;  %v916_v22 = vld [vmem:[%s3955_s2 + $0x1c0] sm:$0xff]  ;;  %v919_v23 = vld [vmem:[%s3955_s2 + $0x1d8] sm:$0xff] }
 0x161   :  { %1479 = vmatprep.mubr.f32.mxu0 %v891_v24  ;;  %1639 = vmatprep.mubr.f32.mxu1 %v955_v25  ;;  %v3646_v24 = vpop.permute.xlu0 %1072  ;;  %v3648_v25 = vpop.permute.xlu1 %1097 }
 0x164   :  { %1480 = vmatmul.mubr.f32.gmra.mrb[46].mxu0 %v890_v26  ;;  %1640 = vmatmul.mubr.f32.gmra.mrb[46].mxu1 %v954_v27  ;;  %v918_v26 = vld [vmem:[%s3955_s2 + $0x1d0] sm:$0xff]  ;;  %v921_v27 = vld [vmem:[%s3955_s2 + $0x1e8] sm:$0xff] }
 0x165   :  { %1484 = vmatprep.mubr.f32.mxu0 %v893_v28  ;;  %1644 = vmatprep.mubr.f32.mxu1 %v957_v29  ;;  %v920_v28 = vld [vmem:[%s3955_s2 + $0x1e0] sm:$0xff]  ;;  %v923_v29 = vld [vmem:[%s3955_s2 + $0x1f8] sm:$0xff] }
 0x168   :  { %1485 = vmatmul.mubr.f32.gmra.mrb[48].mxu0 %v892_v30  ;;  %1645 = vmatmul.mubr.f32.gmra.mrb[48].mxu1 %v956_v31  ;;  %v3662_v30 = vpop.permute.xlu0 %1102  ;;  %v3664_v31 = vpop.permute.xlu1 %1107 }
 0x169   :  { %1489 = vmatprep.mubr.f32.mxu0 %v895_v32  ;;  %1649 = vmatprep.mubr.f32.mxu1 %v959_v33  ;;  %v922_v32 = vld [vmem:[%s3955_s2 + $0x1f0] sm:$0xff] }
 0x16c   :  { %1490 = vmatmul.mubr.f32.gmra.mrb[50].mxu0 %v894_v34  ;;  %1650 = vmatmul.mubr.f32.gmra.mrb[50].mxu1 %v958_v35  ;;  %v3669_v33 = vpop.permute.xlu0 %1092  ;;  %v1053_v34 = vpop.permute.xlu1 %1052 }
 0x16d   :  { %1494 = vmatprep.mubr.f32.mxu0 %v897_v36  ;;  %1654 = vmatprep.mubr.f32.mxu1 %v961_v37 }
 0x170   :  { %1495 = vmatmul.mubr.f32.gmra.mrb[52].mxu0 %v896_v38  ;;  %1655 = vmatmul.mubr.f32.gmra.mrb[52].mxu1 %v960_v40  ;;  %v3671_v35 = vpop.permute.xlu0 %1112  ;;  %v3673_v36 = vpop.permute.xlu1 %1132 }
 0x171   :  { %1499 = vmatprep.mubr.f32.mxu0 %v899_v41  ;;  %1659 = vmatprep.mubr.f32.mxu1 %v963_v42 }
 0x174   :  { %1500 = vmatmul.mubr.f32.gmra.mrb[54].mxu0 %v898_v43  ;;  %1660 = vmatmul.mubr.f32.gmra.mrb[54].mxu1 %v962_v44  ;;  %v3675_v37 = vpop.permute.xlu0 %1137  ;;  %v3677_v38 = vpop.permute.xlu1 %1142 }
 0x175   :  { %1504 = vmatprep.mubr.f32.mxu0 %v901_v45  ;;  %1664 = vmatprep.mubr.f32.mxu1 %v965_v46 }
 0x178   :  { %1505 = vmatmul.mubr.f32.gmra.mrb[56].mxu0 %v900_v47  ;;  %1665 = vmatmul.mubr.f32.gmra.mrb[56].mxu1 %v964_v48  ;;  %v3679_v40 = vpop.permute.xlu0 %1117  ;;  %v3681_v41 = vpop.permute.xlu1 %1122 }
 0x179   :  { %1509 = vmatprep.mubr.f32.mxu0 %v903_v49  ;;  %1669 = vmatprep.mubr.f32.mxu1 %v967_v50 }
 0x17c   :  { %1510 = vmatmul.mubr.f32.gmra.mrb[58].mxu0 %v902_v51  ;;  %1670 = vmatmul.mubr.f32.gmra.mrb[58].mxu1 %v966_v52  ;;  %v3683_v42 = vpop.permute.xlu0 %1152  ;;  %v3685_v43 = vpop.permute.xlu1 %1157 }
 0x17d   :  { %1514 = vmatprep.mubr.f32.mxu0 %v905_v53  ;;  %1674 = vmatprep.mubr.f32.mxu1 %v969_v54 }
 0x180   :  { %1515 = vmatmul.mubr.f32.gmra.mrb[60].mxu0 %v904_v55  ;;  %1675 = vmatmul.mubr.f32.gmra.mrb[60].mxu1 %v968_v56  ;;  %v3687_v44 = vpop.permute.xlu0 %1162  ;;  %v3689_v45 = vpop.permute.xlu1 %1147 }
 0x181   :  { %1519 = vmatprep.mubr.f32.mxu0 %v907_v57  ;;  %1679 = vmatprep.mubr.f32.mxu1 %v971_v58 }
 0x184   :  { %1520 = vmatmul.mubr.f32.gmra.mrb[62].mxu0 %v906_v61  ;;  %1680 = vmatmul.mubr.f32.gmra.mrb[62].mxu1 %v970_v62  ;;  %v3691_v46 = vpop.permute.xlu0 %1172  ;;  %v3693_v47 = vpop.permute.xlu1 %1177 }
 0x185   :  { %1524 = vmatprep.mubr.f32.mxu0 %v909_v63  ;;  %1684 = vmatprep.mubr.f32.mxu1 %v973_v0 }
 0x188   :  { %1525 = vmatmul.mubr.f32.gmra.mrb[64].mxu0 %v908_v1  ;;  %1685 = vmatmul.mubr.f32.gmra.mrb[64].mxu1 %v972_v2  ;;  %v3695_v48 = vpop.permute.xlu0 %1182  ;;  %v3697_v49 = vpop.permute.xlu1 %1127 }
 0x189   :  { %1529 = vmatprep.mubr.f32.mxu0 %v911_v3  ;;  %1689 = vmatprep.mubr.f32.mxu1 %v975_v4 }
 0x18c   :  { %1530 = vmatmul.mubr.f32.gmra.mrb[66].mxu0 %v910_v7  ;;  %1690 = vmatmul.mubr.f32.gmra.mrb[66].mxu1 %v974_v8  ;;  %v3699_v50 = vpop.permute.xlu0 %1167  ;;  %v3701_v51 = vpop.permute.xlu1 %1187 }
 0x18d   :  { %1534 = vmatprep.mubr.f32.mxu0 %v913_v9  ;;  %1694 = vmatprep.mubr.f32.mxu1 %v977_v10 }
 0x190   :  { %1535 = vmatmul.mubr.f32.gmra.mrb[68].mxu0 %v912_v13  ;;  %1695 = vmatmul.mubr.f32.gmra.mrb[68].mxu1 %v976_v14  ;;  %v1208_v52 = vpop.permute.xlu0 %1207  ;;  %v1213_v53 = vpop.permute.xlu1 %1212 }
 0x191   :  { %1539 = vmatprep.mubr.f32.mxu0 %v915_v15  ;;  %1699 = vmatprep.mubr.f32.mxu1 %v979_v16 }
 0x194   :  { %1540 = vmatmul.mubr.f32.gmra.mrb[70].mxu0 %v914_v17  ;;  %1700 = vmatmul.mubr.f32.gmra.mrb[70].mxu1 %v978_v18  ;;  %v1218_v54 = vpop.permute.xlu0 %1217  ;;  %v3703_v55 = vpop.permute.xlu1 %1192 }
 0x195   :  { %1544 = vmatprep.mubr.f32.mxu0 %v917_v19  ;;  %3987 = vst [vmem:[#allocation2_spill] sm:$0xff] %v3703_v55 }
 0x198   :  { %1545 = vmatmul.mubr.f32.gmra.mrb[72].mxu0 %v916_v22  ;;  %v3705_v56 = vpop.permute.xlu0 %1197  ;;  %v1228_v57 = vpop.permute.xlu1 %1227 }
 0x199   :  { %1549 = vmatprep.mubr.f32.mxu0 %v919_v23  ;;  %3988 = vst [vmem:[#allocation3_spill] sm:$0xff] %v3705_v56 }
 0x19c   :  { %1550 = vmatmul.mubr.f32.gmra.mrb[74].mxu0 %v918_v26  ;;  %v3707_v58 = vpop.permute.xlu0 %1232  ;;  %v3709_v61 = vpop.permute.xlu1 %1237 }
 0x19d   :  { %1554 = vmatprep.mubr.f32.mxu0 %v921_v27 }
 0x1a0   :  { %1555 = vmatmul.mubr.f32.gmra.mrb[76].mxu0 %v920_v28  ;;  %v1223_v62 = vpop.permute.xlu0 %1222  ;;  %v3711_v63 = vpop.permute.xlu1 %1247 }
 0x1a1   :  { %1559 = vmatprep.mubr.f32.mxu0 %v923_v29 }
 0x1a4   :  { %1560 = vmatmul.mubr.f32.gmra.mrb[78].mxu0 %v922_v32  ;;  %v3713_v0 = vpop.permute.xlu0 %1252  ;;  %v3715_v1 = vpop.permute.xlu1 %1257 }
 0x1a8   :  { %v1203_v8 = vpop.permute.xlu0 %1202  ;;  %v3717_v9 = vpop.permute.xlu1 %1242 }
 0x1ac   :  { %v3719_v32 = vpop.permute.xlu1 %1282 }
 0x1fb   :  { %v1406_v2 = vpop.f32.mrb[16].mxu0  ;;  %v1566_v3 = vpop.f32.mrb[16].mxu1 }
 0x1fc   :  { %v1408_v4 = vpop.f32.mrb[17].mxu0  ;;  %v1568_v7 = vpop.f32.mrb[17].mxu1  ;;  %v1567_v15 = vadd.f32 %v1566_v3, %v1203_v8 }
 0x1fe   :  { %v1737_v26 = vmax.f32 %v1567_v15, 0.0 }
 0x1ff   :  { %v1411_v10 = vpop.f32.mrb[18].mxu0  ;;  %v1571_v13 = vpop.f32.mrb[18].mxu1 }
 0x200   :  { %v1413_v14 = vpop.f32.mrb[19].mxu0  ;;  %v1572_v16 = vadd.f32 %v1571_v13, %v1208_v52  ;;  %v1573_v17 = vpop.f32.mrb[19].mxu1 }
 0x202   :  { %v1738_v27 = vmax.f32 %v1572_v16, 0.0 }
 0x203   :  { %v1416_v18 = vpop.f32.mrb[20].mxu0  ;;  %v1576_v19 = vpop.f32.mrb[20].mxu1 }
 0x204   :  { %v1417_v22 = vadd.f32 %v1416_v18, %v1053_v34  ;;  %v1418_v23 = vpop.f32.mrb[21].mxu0  ;;  %v1577_v28 = vadd.f32 %v1576_v19, %v1213_v53  ;;  %v1578_v29 = vpop.f32.mrb[21].mxu1  ;;  %v1903_v7 = vrot.slane %v1738_v27, 6 }
 0x206   :  { %v1707_v4 = vmax.f32 %v1417_v22, 0.0  ;;  %v1739_v39 = vmax.f32 %v1577_v28, 0.0 }
 0x207   :  { %v1421_v56 = vpop.f32.mrb[22].mxu0  ;;  %v1581_v55 = vpop.f32.mrb[22].mxu1 }
 0x208   :  { %v1422_v3 = vadd.f32 %v1421_v56, %v3567_v59  ;;  %v3722_v52 = vmax.f32 %v1707_v4, %v1737_v26  ;;  %v1423_v8 = vpop.f32.mrb[23].mxu0  ;;  %v1904_v13 = vrot.slane %v1739_v39, 6  ;;  %v1582_v34 = vadd.f32 %v1581_v55, %v1218_v54  ;;  %v1583_v14 = vpop.f32.mrb[23].mxu1 }
 0x209   :  { %v1407_v56 = vadd.f32 %v1406_v2, %v3636_v20  ;;  %v3731_v39 = vpop.permute.xlu1 %1292  ;;  %v1412_v20 = vadd.f32 %v1411_v10, %v3638_v21  ;;  %v2024_v21 = vld [vmem:[%s3958_s4] sm:$0xff] }
 0x20a   :  { %v1708_v15 = vmax.f32 %v1422_v3, 0.0  ;;  %v1740_v16 = vmax.f32 %v1582_v34, 0.0  ;;  %v3725_v53 = vsel %vm1770_vm4, %v1903_v7, %v1904_v13  ;;  %2542 = vmatprep.mubr.msk.f32.mxu1 %vm2052_vm5, %v2024_v21 }
 0x20b   :  { %v1426_v17 = vpop.f32.mrb[24].mxu0  ;;  %v1586_v18 = vpop.f32.mrb[24].mxu1  ;;  %v1706_v10 = vmax.f32 %v1412_v20, 0.0 }
 0x20c   :  { %v3727_v19 = vmax.f32 %v1708_v15, %v1738_v27  ;;  %v1427_v22 = vadd.f32 %v1426_v17, %v3595_v5  ;;  %v1428_v23 = vpop.f32.mrb[25].mxu0  ;;  %v1906_v28 = vrot.slane %v1740_v16, 6  ;;  %v1588_v59 = vpop.f32.mrb[25].mxu1  ;;  %v1587_v26 = vadd.f32 %v1586_v18, %v1223_v62 }
 0x20d   :  { %v1771_v3 = vrot.slane %v1708_v15, 6  ;;  %v1705_v16 = vmax.f32 %v1407_v56, 0.0 }
 0x20e   :  { %v1709_v54 = vmax.f32 %v1427_v22, 0.0  ;;  %v3734_v55 = vsel %vm1770_vm4, %v1904_v13, %v1906_v28  ;;  %v1741_v4 = vmax.f32 %v1587_v26, 0.0 }
 0x20f   :  { %v1431_v29 = vpop.f32.mrb[26].mxu0  ;;  %v1591_v7 = vpop.f32.mrb[26].mxu1 }
 0x210   :  { %v1772_v27 = vrot.slane %v1709_v54, 6  ;;  %v1432_v8 = vadd.f32 %v1431_v29, %v3569_v60  ;;  %v1433_v5 = vpop.f32.mrb[27].mxu0  ;;  %v1592_v34 = vadd.f32 %v1591_v7, %v1228_v57  ;;  %v1593_v14 = vpop.f32.mrb[27].mxu1  ;;  %v1908_v62 = vrot.slane %v1741_v4, 6 }
 0x212   :  { %v1773_v2 = vsel %vm1770_vm4, %v1771_v3, %v1772_v27  ;;  %v1710_v17 = vmax.f32 %v1432_v8, 0.0  ;;  %v1742_v18 = vmax.f32 %v1592_v34, 0.0  ;;  %v1909_v22 = vsel %vm1770_vm4, %v1906_v28, %v1908_v62  ;;  %v3749_v28 = vpop.permute.xlu1 %1272 }
 0x213   :  { %v3739_v13 = vmax.f32 %v1705_v16, %v1773_v2  ;;  %v1436_v23 = vpop.f32.mrb[28].mxu0  ;;  %v1596_v15 = vpop.f32.mrb[28].mxu1  ;;  %v1808_v60 = vmax.f32 %v3722_v52, %v1909_v22 }
 0x214   :  { %v1774_v59 = vrot.slane %v1710_v17, 6  ;;  %v1910_v57 = vrot.slane %v1742_v18, 6  ;;  %v1438_v26 = vpop.f32.mrb[29].mxu0  ;;  %v1598_v56 = vpop.f32.mrb[29].mxu1  ;;  %v1437_v54 = vadd.f32 %v1436_v23, %v3646_v24  ;;  %v1597_v29 = vadd.f32 %v1596_v15, %v3707_v58 }
 0x215   :  { %v1924_v2 = vrot.slane %v1742_v18, 4 }
 0x216   :  { %v1775_v4 = vsel %vm1770_vm4, %v1772_v27, %v1774_v59  ;;  %v1911_v52 = vsel %vm1770_vm4, %v1908_v62, %v1910_v57  ;;  %v1711_v8 = vmax.f32 %v1437_v54, 0.0  ;;  %v1743_v5 = vmax.f32 %v1597_v29, 0.0  ;;  %v1263_v54 = vpop.permute.xlu0 %1262  ;;  %v3764_v29 = vpop.permute.xlu1 %1307 }
 0x217   :  { %v3753_v7 = vmax.f32 %v1706_v10, %v1775_v4  ;;  %v1809_v3 = vmax.f32 %v3727_v19, %v1911_v52  ;;  %v1441_v34 = vpop.f32.mrb[30].mxu0  ;;  %v1601_v14 = vpop.f32.mrb[30].mxu1 }
 0x218   :  { %v1442_v24 = vadd.f32 %v1441_v34, %v3597_v6  ;;  %v1602_v58 = vadd.f32 %v1601_v14, %v3709_v61  ;;  %v1443_v16 = vpop.f32.mrb[31].mxu0  ;;  %v1603_v20 = vpop.f32.mrb[31].mxu1  ;;  %v1776_v17 = vrot.slane %v1711_v8, 6  ;;  %v1925_v27 = vrot.slane %v1743_v5, 4 }
 0x21a   :  { %v1712_v22 = vmax.f32 %v1442_v24, 0.0  ;;  %v1744_v62 = vmax.f32 %v1602_v58, 0.0  ;;  %v1777_v23 = vsel %vm1770_vm4, %v1774_v59, %v1776_v17  ;;  %v3760_v19 = vsel %vm1792_vm6, %v1924_v2, %v1925_v27 }
 0x21b   :  { %v1446_v15 = vpop.f32.mrb[32].mxu0  ;;  %v1606_v57 = vpop.f32.mrb[32].mxu1  ;;  %v1827_v26 = vmax.f32 %v1808_v60, %v1777_v23 }
 0x21c   :  { %v1778_v56 = vrot.slane %v1712_v22, 6  ;;  %v1927_v21 = vrot.slane %v1744_v62, 4  ;;  %v1448_v6 = vpop.f32.mrb[33].mxu0  ;;  %v1608_v10 = vpop.f32.mrb[33].mxu1  ;;  %v1447_v61 = vadd.f32 %v1446_v15, %v3611_v11  ;;  %v1607_v18 = vadd.f32 %v1606_v57, %v3717_v9 }
 0x21d   :  { %v1793_v58 = vrot.slane %v1712_v22, 4 }
 0x21e   :  { %v1779_v4 = vsel %vm1770_vm4, %v1776_v17, %v1778_v56  ;;  %v3768_v59 = vsel %vm1792_vm6, %v1925_v27, %v1927_v21  ;;  %v1713_v8 = vmax.f32 %v1447_v61, 0.0  ;;  %v1745_v60 = vmax.f32 %v1607_v18, 0.0  ;;  %v3782_v61 = vpop.permute.xlu0 %1287  ;;  %v3784_v18 = vpop.permute.xlu1 %1297 }
 0x21f   :  { %v3770_v52 = vmax.f32 %v1809_v3, %v1779_v4  ;;  %v1451_v5 = vpop.f32.mrb[34].mxu0  ;;  %v1611_v34 = vpop.f32.mrb[34].mxu1 }
 0x220   :  { %v1452_v14 = vadd.f32 %v1451_v5, %v3613_v12  ;;  %v1612_v11 = vadd.f32 %v1611_v34, %v3711_v63  ;;  %v1453_v24 = vpop.f32.mrb[35].mxu0  ;;  %v1613_v9 = vpop.f32.mrb[35].mxu1  ;;  %v1794_v16 = vrot.slane %v1713_v8, 4  ;;  %v1929_v20 = vrot.slane %v1745_v60, 4 }
 0x222   :  { %v1714_v2 = vmax.f32 %v1452_v14, 0.0  ;;  %v1746_v17 = vmax.f32 %v1612_v11, 0.0  ;;  %v3775_v27 = vsel %vm1792_vm6, %v1793_v58, %v1794_v16  ;;  %v1930_v3 = vsel %vm1792_vm6, %v1927_v21, %v1929_v20 }
 0x223   :  { %v1456_v62 = vpop.f32.mrb[36].mxu0  ;;  %v1616_v23 = vpop.f32.mrb[36].mxu1  ;;  %v1831_v15 = vmax.f32 %v1827_v26, %v1930_v3  ;;  %v1806_v10 = vmax.f32 %v3739_v13, %v3775_v27 }
 0x224   :  { %v1796_v57 = vrot.slane %v1714_v2, 4  ;;  %v1931_v56 = vrot.slane %v1746_v17, 4  ;;  %v1458_v12 = vpop.f32.mrb[37].mxu0  ;;  %v1618_v6 = vpop.f32.mrb[37].mxu1  ;;  %v1457_v63 = vadd.f32 %v1456_v62, %v3669_v33  ;;  %v1617_v22 = vadd.f32 %v1616_v23, %v3713_v0 }
 0x225   :  { %v1944_v24 = vrot.slane %v1746_v17, 2  ;;  %v3800_v17 = vpop.permute.xlu0 %1267  ;;  %v3802_v6 = vpop.permute.xlu1 %1327 }
 0x226   :  { %v3787_v21 = vsel %vm1792_vm6, %v1794_v16, %v1796_v57  ;;  %v1932_v26 = vsel %vm1792_vm6, %v1929_v20, %v1931_v56  ;;  %v1715_v8 = vmax.f32 %v1457_v63, 0.0  ;;  %v1747_v60 = vmax.f32 %v1617_v22, 0.0 }
 0x227   :  { %v1832_v4 = vmax.f32 %v3770_v52, %v1932_v26  ;;  %v1461_v5 = vpop.f32.mrb[38].mxu0  ;;  %v1621_v33 = vpop.f32.mrb[38].mxu1  ;;  %v1807_v0 = vmax.f32 %v3753_v7, %v3787_v21 }
 0x228   :  { %v1462_v13 = vadd.f32 %v1461_v5, %v3648_v25  ;;  %v1622_v34 = vadd.f32 %v1621_v33, %v3715_v1  ;;  %v1463_v14 = vpop.f32.mrb[39].mxu0  ;;  %v1623_v11 = vpop.f32.mrb[39].mxu1  ;;  %v1798_v9 = vrot.slane %v1715_v8, 4  ;;  %v1945_v58 = vrot.slane %v1747_v60, 2 }
 0x22a   :  { %v1716_v16 = vmax.f32 %v1462_v13, 0.0  ;;  %v1748_v20 = vmax.f32 %v1622_v34, 0.0  ;;  %v1799_v52 = vsel %vm1792_vm6, %v1796_v57, %v1798_v9  ;;  %v3797_v2 = vsel %vm1813_vm7, %v1944_v24, %v1945_v58 }
 0x22b   :  { %v1466_v27 = vpop.f32.mrb[40].mxu0  ;;  %v1626_v3 = vpop.f32.mrb[40].mxu1  ;;  %v1853_v7 = vmax.f32 %v1831_v15, %v1799_v52 }
 0x22c   :  { %v1800_v62 = vrot.slane %v1716_v16, 4  ;;  %v1947_v23 = vrot.slane %v1748_v20, 2  ;;  %v1468_v25 = vpop.f32.mrb[41].mxu0  ;;  %v1628_v56 = vpop.f32.mrb[41].mxu1  ;;  %v1467_v1 = vadd.f32 %v1466_v27, %v3662_v30  ;;  %v1627_v12 = vadd.f32 %v1626_v3, %v1263_v54 }
 0x22d   :  { %v1814_v30 = vrot.slane %v1716_v16, 2  ;;  %v3816_v16 = vpop.permute.xlu0 %1302  ;;  %v1278_v25 = vpop.permute.xlu1 %1277 }
 0x22e   :  { %v3805_v63 = vsel %vm1813_vm7, %v1945_v58, %v1947_v23  ;;  %v1801_v57 = vsel %vm1792_vm6, %v1798_v9, %v1800_v62  ;;  %v1717_v22 = vmax.f32 %v1467_v1, 0.0  ;;  %v1749_v21 = vmax.f32 %v1627_v12, 0.0 }
 0x22f   :  { %v1471_v26 = vpop.f32.mrb[42].mxu0  ;;  %v3808_v15 = vpop.f32.mrb[42].mxu1 }
 0x230   :  { %v1472_v8 = vadd.f32 %v1471_v26, %v3664_v31  ;;  %v1473_v60 = vpop.f32.mrb[43].mxu0  ;;  %v1633_v5 = vpop.f32.mrb[43].mxu1  ;;  %v1815_v54 = vrot.slane %v1717_v22, 2  ;;  %v1949_v33 = vrot.slane %v1749_v21, 2 }
 0x232   :  { %v1718_v13 = vmax.f32 %v1472_v8, 0.0  ;;  %v1854_v34 = vmax.f32 %v1832_v4, %v1949_v33  ;;  %v1950_v14 = vsel %vm1813_vm7, %v1947_v23, %v1949_v33  ;;  %v1816_v9 = vsel %vm1813_vm7, %v1814_v30, %v1815_v54 }
 0x233   :  { %v1476_v11 = vpop.f32.mrb[44].mxu0  ;;  %v3812_v24 = vpop.f32.mrb[44].mxu1  ;;  %v1874_v58 = vmax.f32 %v1853_v7, %v1950_v14  ;;  %v1825_v62 = vmax.f32 %v1806_v10, %v1816_v9 }
 0x234   :  { %v1817_v20 = vrot.slane %v1718_v13, 2  ;;  %v1477_v52 = vadd.f32 %v1476_v11, %v3671_v35  ;;  %v1478_v27 = vpop.f32.mrb[45].mxu0  ;;  %v1638_v31 = vpop.f32.mrb[45].mxu1  ;;  %v1875_v3 = vmax.f32 %v1854_v34, %v1801_v57 }
 0x235   :  { %v3827_v14 = vpop.permute.xlu0 %1312 }
 0x236   :  { %v1719_v56 = vmax.f32 %v1477_v52, 0.0  ;;  %v1818_v4 = vsel %vm1813_vm7, %v1815_v54, %v1817_v20 }
 0x237   :  { %v1481_v23 = vpop.f32.mrb[46].mxu0  ;;  %v1641_v1 = vpop.f32.mrb[46].mxu1  ;;  %v1826_v12 = vmax.f32 %v1807_v0, %v1818_v4 }
 0x238   :  { %v1819_v22 = vrot.slane %v1719_v56, 2  ;;  %v1482_v21 = vadd.f32 %v1481_v23, %v3679_v40  ;;  %v1642_v7 = vadd.f32 %v1641_v1, %v1278_v25  ;;  %v1483_v26 = vpop.f32.mrb[47].mxu0  ;;  %v1643_v8 = vpop.f32.mrb[47].mxu1 }
 0x239   :  { %v3835_v8 = vpop.permute.xlu0 %1322 }
 0x23a   :  { %v1893_v35 = vmax.f32 %v1875_v3, %v1819_v22  ;;  %v1720_v60 = vmax.f32 %v1482_v21, 0.0  ;;  %v1752_v5 = vmax.f32 %v1642_v7, 0.0  ;;  %v3821_v10 = vsel %vm1813_vm7, %v1817_v20, %v1819_v22 }
 0x23b   :  { %v1486_v57 = vpop.f32.mrb[48].mxu0  ;;  %v1646_v30 = vpop.f32.mrb[48].mxu1 }
 0x23c   :  { %v3823_v33 = vmax.f32 %v1825_v62, %v1720_v60  ;;  %v1892_v54 = vmax.f32 %v1874_v58, %v1752_v5  ;;  %v1487_v13 = vadd.f32 %v1486_v57, %v3681_v41  ;;  %v1647_v0 = vadd.f32 %v1646_v30, %v3719_v32  ;;  %v1488_v34 = vpop.f32.mrb[49].mxu0  ;;  %v1648_v40 = vpop.f32.mrb[49].mxu1 }
 0x23e   :  { %v1721_v11 = vmax.f32 %v1487_v13, 0.0  ;;  %v1753_v9 = vmax.f32 %v1647_v0, 0.0 }
 0x23f   :  { %v1491_v52 = vpop.f32.mrb[50].mxu0  ;;  %v1651_v27 = vpop.f32.mrb[50].mxu1 }
 0x240   :  { %v3829_v31 = vmax.f32 %v1826_v12, %v1721_v11  ;;  %v1897_v20 = vmax.f32 %v1893_v35, %v1753_v9  ;;  %v1492_v3 = vadd.f32 %v1491_v52, %v3697_v49  ;;  %v1493_v62 = vpop.f32.mrb[51].mxu0  ;;  %v1653_v25 = vpop.f32.mrb[51].mxu1  ;;  %v1652_v58 = vadd.f32 %v1651_v27, %v3782_v61 }
 0x241   :  { %v1968_v12 = vrot.slane %v1753_v9, 6 }
 0x242   :  { %v1722_v41 = vmax.f32 %v1492_v3, 0.0  ;;  %v1754_v56 = vmax.f32 %v1652_v58, 0.0  ;;  %v3850_v58 = vpop.permute.xlu0 %1332 }
 0x243   :  { %v1496_v32 = vpop.f32.mrb[52].mxu0  ;;  %v1656_v4 = vpop.f32.mrb[52].mxu1 }
 0x244   :  { %v1896_v23 = vmax.f32 %v1892_v54, %v1722_v41  ;;  %v1497_v1 = vadd.f32 %v1496_v32, %v3673_v36  ;;  %v1657_v22 = vadd.f32 %v1656_v4, %v3731_v39  ;;  %v1498_v21 = vpop.f32.mrb[53].mxu0  ;;  %v1658_v7 = vpop.f32.mrb[53].mxu1  ;;  %v1969_v26 = vrot.slane %v1754_v56, 6 }
 0x246   :  { %v1918_v49 = vmax.f32 %v1896_v23, %v3821_v10  ;;  %v1723_v35 = vmax.f32 %v1497_v1, 0.0  ;;  %v1755_v60 = vmax.f32 %v1657_v22, 0.0  ;;  %v3839_v61 = vsel %vm1770_vm4, %v1968_v12, %v1969_v26 }
 0x247   :  { %v1501_v5 = vpop.f32.mrb[54].mxu0  ;;  %v1661_v57 = vpop.f32.mrb[54].mxu1 }
 0x248   :  { %v3841_v30 = vmax.f32 %v1897_v20, %v1723_v35  ;;  %v1971_v36 = vrot.slane %v1755_v60, 6  ;;  %v1502_v39 = vadd.f32 %v1501_v5, %v3675_v37  ;;  %v1503_v54 = vpop.f32.mrb[55].mxu0  ;;  %v1663_v13 = vpop.f32.mrb[55].mxu1  ;;  %v1662_v0 = vadd.f32 %v1661_v57, %v3784_v18 }
 0x249   :  { %v1838_v52 = vrot.slane %v1723_v35, 6 }
 0x24a   :  { %v3846_v34 = vsel %vm1770_vm4, %v1969_v26, %v1971_v36  ;;  %v1724_v10 = vmax.f32 %v1502_v39, 0.0  ;;  %v1756_v40 = vmax.f32 %v1662_v0, 0.0 }
 0x24b   :  { %v1506_v11 = vpop.f32.mrb[56].mxu0  ;;  %v1666_v9 = vpop.f32.mrb[56].mxu1 }
 0x24c   :  { %v1839_v27 = vrot.slane %v1724_v10, 6  ;;  %v1507_v3 = vadd.f32 %v1506_v11, %v3677_v38  ;;  %v1667_v20 = vadd.f32 %v1666_v9, %v3816_v16  ;;  %v1508_v62 = vpop.f32.mrb[57].mxu0  ;;  %v1668_v25 = vpop.f32.mrb[57].mxu1  ;;  %v1973_v37 = vrot.slane %v1756_v40, 6 }
 0x24d   :  { %v1318_v9 = vpop.permute.xlu0 %1317 }
 0x24e   :  { %v3853_v18 = vsel %vm1770_vm4, %v1838_v52, %v1839_v27  ;;  %v1725_v41 = vmax.f32 %v1507_v3, 0.0  ;;  %v1757_v56 = vmax.f32 %v1667_v20, 0.0  ;;  %v1974_v4 = vsel %vm1770_vm4, %v1971_v36, %v1973_v37 }
 0x24f   :  { %v1851_v32 = vmax.f32 %v3823_v33, %v3853_v18  ;;  %v1511_v23 = vpop.f32.mrb[58].mxu0  ;;  %v1671_v1 = vpop.f32.mrb[58].mxu1  ;;  %v1939_v38 = vmax.f32 %v1918_v49, %v1974_v4 }
 0x250   :  { %v1841_v22 = vrot.slane %v1725_v41, 6  ;;  %v1975_v16 = vrot.slane %v1757_v56, 6  ;;  %v1513_v21 = vpop.f32.mrb[59].mxu0  ;;  %v1673_v7 = vpop.f32.mrb[59].mxu1  ;;  %v1512_v12 = vadd.f32 %v1511_v23, %v3689_v45  ;;  %v1672_v26 = vadd.f32 %v1671_v1, %v3764_v29 }
 0x251   :  { %v1989_v10 = vrot.slane %v1757_v56, 4 }
 0x252   :  { %v3861_v35 = vsel %vm1770_vm4, %v1839_v27, %v1841_v22  ;;  %v1976_v60 = vsel %vm1770_vm4, %v1973_v37, %v1975_v16  ;;  %v1726_v36 = vmax.f32 %v1512_v12, 0.0  ;;  %v1758_v49 = vmax.f32 %v1672_v26, 0.0 }
 0x253   :  { %v1852_v5 = vmax.f32 %v3829_v31, %v3861_v35  ;;  %v1940_v57 = vmax.f32 %v3841_v30, %v1976_v60  ;;  %v1516_v39 = vpop.f32.mrb[60].mxu0  ;;  %v1676_v54 = vpop.f32.mrb[60].mxu1 }
 0x254   :  { %v1517_v13 = vadd.f32 %v1516_v39, %v3683_v42  ;;  %v1677_v45 = vadd.f32 %v1676_v54, %v3827_v14  ;;  %v1518_v0 = vpop.f32.mrb[61].mxu0  ;;  %v1678_v29 = vpop.f32.mrb[61].mxu1  ;;  %v1843_v40 = vrot.slane %v1726_v36, 6  ;;  %v1990_v11 = vrot.slane %v1758_v49, 4 }
 0x256   :  { %v1727_v52 = vmax.f32 %v1517_v13, 0.0  ;;  %v1759_v27 = vmax.f32 %v1677_v45, 0.0  ;;  %v1844_v31 = vsel %vm1770_vm4, %v1841_v22, %v1843_v40  ;;  %v3871_v30 = vsel %vm1792_vm6, %v1989_v10, %v1990_v11 }
 0x257   :  { %v1521_v3 = vpop.f32.mrb[62].mxu0  ;;  %v1681_v20 = vpop.f32.mrb[62].mxu1  ;;  %v1957_v62 = vmax.f32 %v1939_v38, %v1844_v31 }
 0x258   :  { %v1845_v25 = vrot.slane %v1727_v52, 6  ;;  %v1992_v42 = vrot.slane %v1759_v27, 4  ;;  %v1523_v37 = vpop.f32.mrb[63].mxu0  ;;  %v1683_v14 = vpop.f32.mrb[63].mxu1  ;;  %v1522_v41 = vadd.f32 %v1521_v3, %v3685_v43  ;;  %v1682_v56 = vadd.f32 %v1681_v20, %v1318_v9 }
 0x259   :  { %v1859_v60 = vrot.slane %v1727_v52, 4 }
 0x25a   :  { %v1846_v4 = vsel %vm1770_vm4, %v1843_v40, %v1845_v25  ;;  %v3876_v23 = vsel %vm1792_vm6, %v1990_v11, %v1992_v42  ;;  %v1728_v22 = vmax.f32 %v1522_v41, 0.0  ;;  %v1760_v16 = vmax.f32 %v1682_v56, 0.0  ;;  %v1338_v41 = vpop.permute.xlu1 %1337 }
 0x25b   :  { %v3878_v1 = vmax.f32 %v1940_v57, %v1846_v4  ;;  %v1526_v21 = vpop.f32.mrb[64].mxu0  ;;  %v1686_v7 = vpop.f32.mrb[64].mxu1 }
 0x25c   :  { %v1527_v38 = vadd.f32 %v1526_v21, %v3687_v44  ;;  %v1687_v12 = vadd.f32 %v1686_v7, %v3835_v8  ;;  %v1528_v26 = vpop.f32.mrb[65].mxu0  ;;  %v1688_v35 = vpop.f32.mrb[65].mxu1  ;;  %v1860_v43 = vrot.slane %v1728_v22, 4  ;;  %v1994_v36 = vrot.slane %v1760_v16, 4 }
 0x25e   :  { %v1729_v49 = vmax.f32 %v1527_v38, 0.0  ;;  %v1761_v39 = vmax.f32 %v1687_v12, 0.0  ;;  %v1861_v54 = vsel %vm1792_vm6, %v1859_v60, %v1860_v43  ;;  %v1995_v57 = vsel %vm1792_vm6, %v1992_v42, %v1994_v36 }
 0x25f   :  { %v1531_v13 = vpop.f32.mrb[66].mxu0  ;;  %v1691_v45 = vpop.f32.mrb[66].mxu1  ;;  %v1961_v0 = vmax.f32 %v1957_v62, %v1995_v57  ;;  %v3889_v9 = vmax.f32 %v1851_v32, %v1861_v54 }
 0x260   :  { %v1862_v29 = vrot.slane %v1729_v49, 4  ;;  %v1996_v10 = vrot.slane %v1761_v39, 4  ;;  %v1533_v40 = vpop.f32.mrb[67].mxu0  ;;  %v1693_v44 = vpop.f32.mrb[67].mxu1  ;;  %v1532_v8 = vadd.f32 %v1531_v13, %v3699_v50  ;;  %v1692_v11 = vadd.f32 %v1691_v45, %v3802_v6 }
 0x261   :  { %v2009_v18 = vrot.slane %v1761_v39, 2 }
 0x262   :  { %v1863_v52 = vsel %vm1792_vm6, %v1860_v43, %v1862_v29  ;;  %v1997_v27 = vsel %vm1792_vm6, %v1994_v36, %v1996_v10  ;;  %v1730_v3 = vmax.f32 %v1532_v8, 0.0  ;;  %v1762_v20 = vmax.f32 %v1692_v11, 0.0 }
 0x263   :  { %v1962_v31 = vmax.f32 %v3878_v1, %v1997_v27  ;;  %v1536_v62 = vpop.f32.mrb[68].mxu0  ;;  %v1696_v25 = vpop.f32.mrb[68].mxu1  ;;  %v3894_v42 = vmax.f32 %v1852_v5, %v1863_v52 }
 0x264   :  { %v1537_v50 = vadd.f32 %v1536_v62, %v3691_v46  ;;  %v1697_v6 = vadd.f32 %v1696_v25, %v3850_v58  ;;  %v1538_v37 = vpop.f32.mrb[69].mxu0  ;;  %v1698_v33 = vpop.f32.mrb[69].mxu1  ;;  %v1864_v32 = vrot.slane %v1730_v3, 4  ;;  %v2010_v14 = vrot.slane %v1762_v20, 2 }
 0x266   :  { %v1731_v56 = vmax.f32 %v1537_v50, 0.0  ;;  %v1763_v4 = vmax.f32 %v1697_v6, 0.0  ;;  %v1865_v1 = vsel %vm1792_vm6, %v1862_v29, %v1864_v32  ;;  %v3900_v22 = vsel %vm1813_vm7, %v2009_v18, %v2010_v14  ;;  %v3989_v50 = vld [vmem:[#allocation2_spill] sm:$0xff] }
 0x267   :  { %v1541_v16 = vpop.f32.mrb[70].mxu0  ;;  %v1701_v5 = vpop.f32.mrb[70].mxu1  ;;  %v1983_v21 = vmax.f32 %v1961_v0, %v1865_v1 }
 0x268   :  { %v1866_v7 = vrot.slane %v1731_v56, 4  ;;  %v2012_v46 = vrot.slane %v1763_v4, 2  ;;  %v1543_v38 = vpop.f32.mrb[71].mxu0  ;;  %v1703_v58 = vpop.f32.mrb[71].mxu1  ;;  %v1542_v12 = vadd.f32 %v1541_v16, %v3693_v47  ;;  %v1702_v26 = vadd.f32 %v1701_v5, %v1338_v41 }
 0x269   :  { %v1879_v57 = vrot.slane %v1731_v56, 2  ;;  %v3990_v56 = vld [vmem:[#allocation3_spill] sm:$0xff]  ;;  %v1632_v16 = vadd.f32 %v3808_v15, %v3800_v17  ;;  %v1637_v38 = vadd.f32 %v3812_v24, %v3749_v28 }
 0x26a   :  { %v2013_v35 = vsel %vm1813_vm7, %v2010_v14, %v2012_v46  ;;  %v1867_v60 = vsel %vm1792_vm6, %v1864_v32, %v1866_v7  ;;  %v1732_v43 = vmax.f32 %v1542_v12, 0.0  ;;  %v1764_v36 = vmax.f32 %v1702_v26, 0.0 }
 0x26b   :  { %v1546_v49 = vpop.f32.mrb[72].mxu0 }
 0x26c   :  { %v1547_v39 = vadd.f32 %v1546_v49, %v3695_v48  ;;  %v1548_v54 = vpop.f32.mrb[73].mxu0  ;;  %v1880_v13 = vrot.slane %v1732_v43, 2  ;;  %v2014_v45 = vrot.slane %v1764_v36, 2  ;;  %v1751_v43 = vmax.f32 %v1637_v38, 0.0 }
 0x26e   :  { %v1733_v0 = vmax.f32 %v1547_v39, 0.0  ;;  %v1984_v29 = vmax.f32 %v1962_v31, %v2014_v45  ;;  %v2015_v10 = vsel %vm1813_vm7, %v2012_v46, %v2014_v45  ;;  %v1881_v47 = vsel %vm1813_vm7, %v1879_v57, %v1880_v13 }
 0x26f   :  { %v1551_v40 = vpop.f32.mrb[74].mxu0  ;;  %v2004_v44 = vmax.f32 %v1983_v21, %v2015_v10  ;;  %v1890_v27 = vmax.f32 %v3889_v9, %v1881_v47  ;;  %v1750_v46 = vmax.f32 %v1632_v16, 0.0 }
 0x270   :  { %v1882_v8 = vrot.slane %v1733_v0, 2  ;;  %v1552_v11 = vadd.f32 %v1551_v40, %v3701_v51  ;;  %v1553_v52 = vpop.f32.mrb[75].mxu0  ;;  %v2005_v3 = vmax.f32 %v1984_v29, %v1867_v60 }
 0x272   :  { %v1734_v48 = vmax.f32 %v1552_v11, 0.0  ;;  %v1883_v20 = vsel %vm1813_vm7, %v1880_v13, %v1882_v8 }
 0x273   :  { %v1556_v62 = vpop.f32.mrb[76].mxu0  ;;  %v1891_v25 = vmax.f32 %v3894_v42, %v1883_v20 }
 0x274   :  { %v1884_v31 = vrot.slane %v1734_v48, 2  ;;  %v1557_v6 = vadd.f32 %v1556_v62, %v3989_v50  ;;  %v1558_v37 = vpop.f32.mrb[77].mxu0 }
 0x276   :  { %v2023_v33 = vmax.f32 %v2005_v3, %v1884_v31  ;;  %v1885_v18 = vsel %vm1813_vm7, %v1882_v8, %v1884_v31  ;;  %v1735_v32 = vmax.f32 %v1557_v6, 0.0 }
 0x277   :  { %v2022_v14 = vmax.f32 %v2004_v44, %v1885_v18  ;;  %v1561_v51 = vpop.f32.mrb[78].mxu0 }
 0x278   :  { %v1894_v41 = vmax.f32 %v1890_v27, %v1735_v32  ;;  %v1562_v9 = vadd.f32 %v1561_v51, %v3990_v56  ;;  %v1563_v4 = vpop.f32.mrb[79].mxu0  ;;  %v2157_v27 = vld [vmem:[%s3959_s6] sm:$0x3] }
 0x279   :  { %v2675_v1 = vpack.c.bf16 %v2023_v33, %v2022_v14 }
 0x27a   :  { %v1916_v42 = vmax.f32 %v1894_v41, %v3725_v53  ;;  %v1736_v5 = vmax.f32 %v1562_v9, 0.0 }
 0x27c   :  { %v1937_v21 = vmax.f32 %v1916_v42, %v3760_v19  ;;  %v1895_v7 = vmax.f32 %v1891_v25, %v1736_v5 }
 0x27e   :  { %v1955_v58 = vmax.f32 %v1937_v21, %v3797_v2  ;;  %v1917_v12 = vmax.f32 %v1895_v7, %v3734_v55  ;;  %v2025_v55 = vld [vmem:[%s3958_s4 + $0x8] sm:$0xff] }
 0x280   :  { %v1959_v26 = vmax.f32 %v1955_v58, %v1750_v46  ;;  %v1938_v60 = vmax.f32 %v1917_v12, %v3768_v59  ;;  %v2026_v59 = vld [vmem:[%s3958_s4 + $0x10] sm:$0xff] }
 0x282   :  { %v1956_v17 = vmax.f32 %v1938_v60, %v3805_v63  ;;  %v1981_v53 = vmax.f32 %v1959_v26, %v3839_v61  ;;  %v3991_v63 = vmov 0.0|0.0   ;;  %v2027_v61 = vld [vmem:[%s3958_s4 + $0x18] sm:$0xff] }
 0x284   :  { %v1960_v15 = vmax.f32 %v1956_v17, %v1751_v43  ;;  %v2002_v19 = vmax.f32 %v1981_v53, %v3871_v30  ;;  %v2040_v30 = vpop.permute.xlu1 %2039 }
 0x286   :  { %v1982_v36 = vmax.f32 %v1960_v15, %v3846_v34  ;;  %v2020_v49 = vmax.f32 %v2002_v19, %v3900_v22  ;;  %v2732_v34 = vmov 0.0  }
 0x288   :  { %v2003_v28 = vmax.f32 %v1982_v36, %v3876_v23  ;;  %v2035_v23 = vpop.permute.xlu0 %2034  ;;  %v2050_v13 = vpop.permute.xlu1 %2049 }
 0x28a   :  { %v2021_v2 = vmax.f32 %v2003_v28, %v2013_v35 }
 0x28c   :  { %v2671_v24 = vpack.c.bf16 %v2021_v2, %v2020_v49  ;;  %v2045_v29 = vpop.permute.xlu0 %2044 }
 0x28e   :  { %2672 = vmatprep.subr.bf16.mxu1 %v2671_v24 }
 0x28f   :  { %2674 = vmatpush3.bf16.msra.mxu1 %v2671_v24 }
 0x290   :  { %2677 = vmatprep.subr.msk.bf16.mxu1 %vm2676_vm9, %v2675_v1  ;;  %v2162_v3 = vpop.permute.xlu0 %2161 }
 0x293   :  { %2680 = vmatpush3.bf16.msk.msra.mxu1 %vm2676_vm9, %v2675_v1 }
 0x294   :  { %2681 = vmatprep.subr.bf16.mxu1 %v3991_v63 }
 0x296   :  { %2543 = vmatmul.mubr.msk.f32.vlgmr.msra.gmra.mrb[72].mxu1 %vm2052_vm5, %v2025_v55 }
 0x297   :  { %2545 = vmatprep.mubr.msk.f32.mxu1 %vm2052_vm5, %v2026_v59 }
 0x29a   :  { %2546 = vmatmul.mubr.msk.f32.gmra.mrb[74].mxu1 %vm2052_vm5, %v2027_v61 }
 0x29b   :  { %2556 = vmatprep.mubr.msk.f32.mxu1 %vm2731_vm10, %v2732_v34 }
 0x369   :  { %v2544_v22 = vpop.f32.mrb[72].mxu1 }
 0x36a   :  { %v2140_v35 = vadd.f32 %v2544_v22, %v2040_v30  ;;  %v2134_v39 = vpop.f32.mrb[73].mxu1 }
 0x36b   :  { %v2135_v54 = vadd.f32 %v2134_v39, %v2035_v23 }
 0x36c   :  { %v2154_v57 = vmax.f32 %v2140_v35, 0.0 }
 0x36d   :  { %v2153_v45 = vmax.f32 %v2135_v54, 0.0  ;;  %v2547_v0 = vpop.f32.mrb[74].mxu1 }
 0x36e   :  { %v2150_v10 = vadd.f32 %v2547_v0, %v2050_v13  ;;  %v2144_v40 = vpop.f32.mrb[75].mxu1 }
 0x36f   :  { %v2682_v47 = vpack.c.bf16 %v2154_v57, %v2153_v45  ;;  %v2145_v44 = vadd.f32 %v2144_v40, %v2045_v29 }
 0x370   :  { %v2156_v8 = vmax.f32 %v2150_v10, 0.0 }
 0x371   :  { %v2155_v11 = vmax.f32 %v2145_v44, 0.0  ;;  %2683 = vmatpush3.bf16.msra.mxu1 %v2682_v47 }
 0x372   :  { %2684 = vmatprep.subr.bf16.mxu1 %v3991_v63 }
 0x373   :  { %v2685_v52 = vpack.c.bf16 %v2156_v8, %v2155_v11 }
 0x375   :  { %2686 = vmatpush3.bf16.msra.mxu1 %v2685_v52 }
 0x378   :  { %2557 = vmatmul.mubr.msk.f32.vlgmr.msra.gmra.mrb[76].mxu1 %vm55_vm0, %v2157_v27 }
 0x44b   :  { %v2233_v48 = vpop.f32.mrb[76].mxu1 }
 0x44c   :  { %v2234_v20 = vadd.f32 %v2233_v48, %v2162_v3  ;;  %v2558_v62 = vpop.f32.mrb[77].mxu1 }
 0x44e   :  { %2238 = vst.msk [vmem:[%s3960_s8] sm:$0x3] %vm2237_vm11, %v2234_v20 }

</bundles_post_ra>
